<compile_context>
chip_gen: v7x
topology: tpu7x:2x2x1
jax: 0.10.0
libtpu: 0.0.40
codegen_flags: <defaults>
</compile_context>

<pallas_src>
import functools

import jax
import jax.numpy as jnp
from jax.experimental import pallas as pl
from jax.experimental.pallas import tpu as pltpu

_MIB = 1 << 20


# ----------------------------------------------------------------------------
# JAX-side im2col glue.
# ----------------------------------------------------------------------------
def _im2col_nchw(x, ksize, stride, pad):
    """Plain NCHW im2col (used by the pure-JAX reference)."""
    n, c, h, w = x.shape
    xp = jnp.pad(x, ((0, 0), (0, 0), (pad, pad), (pad, pad)))
    hout = (h + 2 * pad - ksize) // stride + 1
    wout = (w + 2 * pad - ksize) // stride + 1
    taps = []
    for kh in range(ksize):
        for kw in range(ksize):
            taps.append(xp[:, :, kh:kh + stride * hout:stride,
                           kw:kw + stride * wout:stride])
    p = jnp.stack(taps, axis=2)                        # (N, C, KK, Hout, Wout)
    return p.reshape(n, c * ksize * ksize, hout * wout), hout, wout


def _im2col_grouped(x, ksize, stride, pad):
    """im2col on activations stored as (ntiles, C, BT, H, W).

    Returns patches (ntiles, C*ksize*ksize, BT*Hout*Wout).  K axis ordered
    (c, kh, kw) -- matches torch_weight.reshape(Cout, -1) -- and the lane axis
    is ordered (sample-in-tile major, spatial minor), i.e. column b*HWout + hw.
    """
    nt, c, btn, h, w = x.shape
    xp = jnp.pad(x, ((0, 0), (0, 0), (0, 0), (pad, pad), (pad, pad)))
    hout = (h + 2 * pad - ksize) // stride + 1
    wout = (w + 2 * pad - ksize) // stride + 1
    taps = []
    for kh in range(ksize):
        for kw in range(ksize):
            taps.append(xp[:, :, :, kh:kh + stride * hout:stride,
                           kw:kw + stride * wout:stride])
    p = jnp.stack(taps, axis=2)                   # (nt, C, KK, BT, Hout, Wout)
    return p.reshape(nt, c * ksize * ksize, btn * hout * wout), hout, wout


def _segment_matrices(bt, hw, dtype=jnp.float32):
    """S[b*hw + h, b] = 1 and S^T.  Segmented (per-sample) sums over the merged
    (sample, spatial) lane axis become plain lane-dense MXU matmuls."""
    r = jnp.arange(bt * hw, dtype=jnp.int32)
    c = jnp.arange(bt, dtype=jnp.int32)
    s = (r[:, None] // hw == c[None, :]).astype(dtype)
    return s, s.T


# ----------------------------------------------------------------------------
# Pallas kernel: one batched matmul + bias / InstanceNorm / LeakyReLU epilogue,
# with optional folding of the final 1x1-output conv (layer 5).
# ----------------------------------------------------------------------------
def _conv_block_kernel(*refs, hw, use_bias, use_in, use_act, fold):
    it = iter(refs)
    p_ref = next(it)                               # (1, K, L)  bf16, L = BT*HW
    w_ref = next(it)                               # (Cout, K)  bf16
    b_ref = next(it) if use_bias else None         # (Cout, 1)  f32
    if use_in:
        g_ref = next(it)                           # (Cout, 1)  f32
        be_ref = next(it)                          # (Cout, 1)  f32
        s_ref = next(it)                           # (L, BT)    f32
        st_ref = next(it)                          # (BT, L)    f32
    if fold:
        w5_ref = next(it)                          # (Cout, L)  f32 (tiled over BT)
        b5_ref = next(it)                          # (1, 1)     f32
    o_ref = next(it)                               # (1, Cout, L) bf16 or (1, 1, BT) f32

    # Single batched MXU matmul per grid step; batch merged into the lane axis.
    y = jnp.dot(w_ref[...], p_ref[0],
                preferred_element_type=jnp.float32)            # (Cout, L) f32

    if use_bias:
        y = y + b_ref[...]                         # per-channel lane-broadcast

    if use_in:
        # InstanceNorm2d(affine=True, eps=1e-5, biased variance), per sample &
        # channel: segmented reductions via matmuls with S / S^T (lane-dense,
        # no lane-splitting reshapes).
        s = s_ref[...]
        st = st_ref[...]
        inv_hw = 1.0 / float(hw)
        mean = jnp.dot(y, s, preferred_element_type=jnp.float32) * inv_hw     # (Cout, BT)
        msq = jnp.dot(y * y, s, preferred_element_type=jnp.float32) * inv_hw  # (Cout, BT)
        var = msq - mean * mean
        rstd = jax.lax.rsqrt(var + 1e-5)
        scale = g_ref[...] * rstd                               # (Cout, BT)
        shift = be_ref[...] - scale * mean                      # (Cout, BT)
        y = (y * jnp.dot(scale, st, preferred_element_type=jnp.float32)
             + jnp.dot(shift, st, preferred_element_type=jnp.float32))

    if use_act:
        y = jnp.maximum(y, 0.2 * y)                # LeakyReLU(0.2), f32 VPU

    if fold:
        # Layer 5 folded in: per-sample dot over (Cout, HW), kept lane-dense
        # (BT on lanes) -> one unmasked (1, BT) store per tile.
        prod = y * w5_ref[...]                                          # (Cout, L)
        per_cs = jnp.dot(prod, s, preferred_element_type=jnp.float32)   # (Cout, BT)
        o_ref[0] = jnp.sum(per_cs, axis=0, keepdims=True) + b5_ref[...]  # (1, BT)
    else:
        o_ref[0] = y.astype(o_ref.dtype)


# ----------------------------------------------------------------------------
# VMEM sizing (conservative: double-buffered tiles, invariants counted twice,
# plus f32 epilogue temporaries).
# ----------------------------------------------------------------------------
def _vmem_bytes(cin, cout, hw, bt, use_in, fold):
    k, L = cin * 16, bt * hw
    b = 2 * (k * L * 2)                              # patches, bf16, x2 buffers
    b += 2 * (bt * 4 if fold else cout * L * 2)      # output, x2 buffers
    b += 2 * (cout * k * 2)                          # weight (counted twice)
    if use_in:
        b += 2 * 2 * (L * bt * 4)                    # S and S^T, f32
    if fold:
        b += 2 * (cout * L * 4)                      # tiled layer-5 weight, f32
    b += 4 * (cout * L * 4)                          # f32 epilogue temporaries
    return b


# ----------------------------------------------------------------------------
# One fused critic layer over a batch-tiled, lane-merged patch tensor.
# ----------------------------------------------------------------------------
def _conv_layer(patches, weight2d, *, hw, bias=None, gamma=None, beta=None,
                seg=None, seg_t=None, fold_w=None, fold_b=None, use_act=True,
                vmem_limit_bytes=32 * _MIB):
    nt, k, L = patches.shape
    cout = weight2d.shape[0]
    bt = L // hw
    use_bias = bias is not None
    use_in = gamma is not None
    fold = fold_w is not None
    assert not fold or use_in, "layer-5 fold is only used on the IN layer 4"

    operands = [patches.astype(jnp.bfloat16), weight2d.astype(jnp.bfloat16)]
    in_specs = [pl.BlockSpec((1, k, L), lambda i: (i, 0, 0)),
                pl.BlockSpec((cout, k), lambda i: (0, 0))]

    def add_const(arr):                     # grid-invariant 2-D operand
        operands.append(arr)
        in_specs.append(pl.BlockSpec(arr.shape, lambda i: (0, 0)))

    if use_bias:
        add_const(bias.reshape(cout, 1).astype(jnp.float32))
    if use_in:
        add_const(gamma.reshape(cout, 1).astype(jnp.float32))
        add_const(beta.reshape(cout, 1).astype(jnp.float32))
        add_const(seg.astype(jnp.float32))
        add_const(seg_t.astype(jnp.float32))
    if fold:
        add_const(jnp.tile(fold_w.astype(jnp.float32), (1, bt)))   # (Cout, L)
        add_const(fold_b.reshape(1, 1).astype(jnp.float32))
        out_shape = jax.ShapeDtypeStruct((nt, 1, bt), jnp.float32)
        out_spec = pl.BlockSpec((1, 1, bt), lambda i: (i, 0, 0))
    else:
        # bf16 activations: they only ever feed the next bf16 matmul.
        out_shape = jax.ShapeDtypeStruct((nt, cout, L), jnp.bfloat16)
        out_spec = pl.BlockSpec((1, cout, L), lambda i: (i, 0, 0))

    kernel = functools.partial(_conv_block_kernel, hw=hw, use_bias=use_bias,
                               use_in=use_in, use_act=use_act, fold=fold)
    return pl.pallas_call(
        kernel,
        out_shape=out_shape,
        grid_spec=pltpu.PrefetchScalarGridSpec(
            num_scalar_prefetch=0,
            grid=(nt,),
            in_specs=in_specs,
            out_specs=out_spec),
        compiler_params=pltpu.CompilerParams(
            dimension_semantics=("parallel",),        # batch tiles independent
            vmem_limit_bytes=vmem_limit_bytes),
    )(*operands)


# ----------------------------------------------------------------------------
# Critic forward pass (NCHW in / NCHW out, like PyTorch).  Input must be 64x64.
# ----------------------------------------------------------------------------
def critic_forward(x_nchw, params, *, batch_tile=32, vmem_budget_bytes=40 * _MIB):
    n, img_c, h0, w0 = x_nchw.shape
    assert h0 == 64 and w0 == 64, "Critic expects 64x64 inputs (final conv -> 1x1)"
    fc = params["l1"]["w"].shape[0]

    # (name, cin, cout, hw_out, use_in, fold)
    layers = [("l1", img_c, fc, 1024, False, False),
              ("l2", fc, 2 * fc, 256, True, False),
              ("l3", 2 * fc, 4 * fc, 64, True, False),
              ("l4", 4 * fc, 8 * fc, 16, True, True)]

    # Batch tile: >= 2 grid steps when n >= 2 (v7x megacore), and small enough
    # that the worst layer fits the VMEM budget (v5e 16 MiB scoped default,
    # v7x 64 MiB physical).
    bt = max(1, min(batch_tile, -(-n // 2)))
    while bt > 1 and max(_vmem_bytes(ci, co, hw_, ui, fo and True) if False else
                         _vmem_bytes(ci, co, hw_, bt, ui, fo)
                         for _, ci, co, hw_, ui, fo in layers) > vmem_budget_bytes:
        bt //= 2
    n_pad = -(-n // bt) * bt
    nt = n_pad // bt

    # bf16 BEFORE im2col: the L1 patch tensor is the largest intermediate.
    x = x_nchw.astype(jnp.bfloat16)
    if n_pad != n:
        x = jnp.pad(x, ((0, n_pad - n), (0, 0), (0, 0), (0, 0)))
    # Grouped (ntiles, C, BT, H, W) layout: batch merges into lanes with no
    # per-layer transposes.
    a = x.reshape(nt, bt, img_c, h0, w0).transpose(0, 2, 1, 3, 4)

    segs = {hw_: _segment_matrices(bt, hw_)
            for _, _, _, hw_, ui, _ in layers if ui}

    out = None
    for name, cin, cout, hw, use_in, fold in layers:
        lp = params[name]
        p, hout, wout = _im2col_grouped(a, 4, 2, 1)
        assert hout * wout == hw
        est = _vmem_bytes(cin, cout, hw, bt, use_in, fold)
        vlim = int(min(56 * _MIB, max(24 * _MIB, 2 * est)))
        kwargs = dict(hw=hw, vmem_limit_bytes=vlim)
        if name == "l1":
            kwargs["bias"] = lp["b"]
        if use_in:
            s, st = segs[hw]
            kwargs.update(gamma=lp["g"], beta=lp["bt"], seg=s, seg_t=st)
        if fold:
            kwargs.update(fold_w=params["l5"]["w"].reshape(-1, 16),
                          fold_b=params["l5"]["b"])
        y = _conv_layer(p, lp["w"].reshape(cout, -1), **kwargs)
        if fold:
            out = y                                        # (nt, 1, bt) f32
        else:
            a = y.reshape(nt, cout, bt, hout, wout)        # grouped layout

    out = out.reshape(n_pad)[:n]
    return out.reshape(n, 1, 1, 1)


# ----------------------------------------------------------------------------
# Pure-JAX reference with matching numerics (bf16 matmul inputs, f32 epilogue).
# ----------------------------------------------------------------------------
def critic_forward_ref(x_nchw, params):
    n = x_nchw.shape[0]

    def block(a, lp, *, use_bias, use_in):
        cout = lp["w"].shape[0]
        p, h, wsp = _im2col_nchw(a, 4, 2, 1)
        y = jnp.einsum("nkh,ck->nch", p.astype(jnp.bfloat16),
                       lp["w"].reshape(cout, -1).astype(jnp.bfloat16),
                       preferred_element_type=jnp.float32)
        if use_bias:
            y = y + lp["b"].reshape(1, cout, 1)
        if use_in:
            mean = jnp.mean(y, axis=2, keepdims=True)
            var = jnp.mean(y * y, axis=2, keepdims=True) - mean * mean
            y = (y - mean) * jax.lax.rsqrt(var + 1e-5)
            y = y * lp["g"].reshape(1, cout, 1) + lp["bt"].reshape(1, cout, 1)
        y = jnp.where(y > 0, y, 0.2 * y)
        return y, h, wsp

    x = x_nchw.astype(jnp.float32)
    y, h, wsp = block(x, params["l1"], use_bias=True, use_in=False)
    a = y.astype(jnp.bfloat16).reshape(n, -1, h, wsp)
    for name in ("l2", "l3"):
        y, h, wsp = block(a, params[name], use_bias=False, use_in=True)
        a = y.astype(jnp.bfloat16).reshape(n, -1, h, wsp)
    y4, h, wsp = block(a, params["l4"], use_bias=False, use_in=True)   # (n, 8fc, 16)
    w5 = params["l5"]["w"].reshape(-1, 16)
    b5 = params["l5"]["b"].reshape(())
    out = jnp.sum(y4 * w5[None], axis=(1, 2)) + b5
    return out.reshape(n, 1, 1, 1)


# ----------------------------------------------------------------------------
# Deterministic parameter init — exact PyTorch shapes:
#   Conv2d.weight (Cout, Cin, 4, 4), Conv2d.bias (Cout,),
#   InstanceNorm2d.weight/bias (Cout,)  (affine=True, as in the module).
# ----------------------------------------------------------------------------
def init_params(key, img_channels, fc):
    specs = [("l1", img_channels, fc), ("l2", fc, 2 * fc), ("l3", 2 * fc, 4 * fc),
             ("l4", 4 * fc, 8 * fc), ("l5", 8 * fc, 1)]
    params = {}
    for name, cin, cout in specs:
        key, kw, kb, kg, kbt = jax.random.split(key, 5)
        params[name] = {
            "w": 0.02 * jax.random.normal(kw, (cout, cin, 4, 4), jnp.float32),
            "b": 0.01 * jax.random.normal(kb, (cout,), jnp.float32),
            "g": 1.0 + 0.1 * jax.random.normal(kg, (cout,), jnp.float32),
            "bt": 0.1 * jax.random.normal(kbt, (cout,), jnp.float32),
        }
    return params


if __name__ == "__main__":
    # 64x64 input is required so the final 4x4/stride-2/pad-0 conv yields 1x1.
    # batch=3 with batch_tile=2 exercises the multi-step grid, the batch-merge
    # into the lane axis and the batch-padding path.
    batch, img_channels, features_c, spatial = 3, 3, 8, 64

    key = jax.random.PRNGKey(0)
    key, kx = jax.random.split(key)
    x = jax.random.normal(kx, (batch, img_channels, spatial, spatial),
                          dtype=jnp.float32)
    params = init_params(key, img_channels, features_c)

    fwd = jax.jit(functools.partial(critic_forward, batch_tile=2))
    out = jax.block_until_ready(fwd(x, params))
    assert out.shape == (batch, 1, 1, 1), out.shape
    assert bool(jnp.all(jnp.isfinite(out)))

    ref = jax.block_until_ready(critic_forward_ref(x, params))
    # bf16 matmul inputs + different (MXU segmented vs jnp.mean) reduction
    # orders -> compare at a slightly widened tolerance.
    assert jnp.allclose(out, ref, atol=2e-2, rtol=2e-2), (out, ref)

    print("KERNEL_OK")
</pallas_src>

<mosaic_0001>
module attributes {stable_mosaic.version = 11 : i64} {
  func.func @_conv_block_kernel(%arg0: i32, %arg1: memref<1x48x2048xbf16, #tpu.memory_space<vmem>>, %arg2: memref<8x48xbf16, #tpu.memory_space<vmem>>, %arg3: memref<8x1xf32, #tpu.memory_space<vmem>>, %arg4: memref<1x8x2048xbf16, #tpu.memory_space<vmem>>) attributes {dimension_semantics = [#tpu.dimension_semantics<parallel>], iteration_bounds = array<i64: 2>, scalar_prefetch = 0 : i64, scratch_operands = 0 : i64, tpu.core_type = #tpu.core_type<tc>, window_params = [{transform_indices = @transform_0, window_bounds = array<i64: 1, 48, 2048>}, {pipeline_mode = #tpu.pipeline_mode<synchronous>, transform_indices = @transform_1, window_bounds = array<i64: 8, 48>}, {pipeline_mode = #tpu.pipeline_mode<synchronous>, transform_indices = @transform_2, window_bounds = array<i64: 8, 1>}, {transform_indices = @transform_3, window_bounds = array<i64: 1, 8, 2048>}]} {
    %c0 = arith.constant 0 : index
    %c0_0 = arith.constant 0 : index
    %0 = vector.load %arg2[%c0, %c0_0] : memref<8x48xbf16, #tpu.memory_space<vmem>>, vector<8x48xbf16>
    %c0_1 = arith.constant 0 : index
    %c0_2 = arith.constant 0 : index
    %c0_3 = arith.constant 0 : index
    %1 = vector.load %arg1[%c0_1, %c0_2, %c0_3] : memref<1x48x2048xbf16, #tpu.memory_space<vmem>>, vector<1x48x2048xbf16>
    %2 = vector.shape_cast %1 : vector<1x48x2048xbf16> to vector<48x2048xbf16>
    %cst = arith.constant dense<0.000000e+00> : vector<8x2048xf32>
    %3 = tpu.matmul %0, %2, %cst {dimension_numbers = #tpu.dot_dimension_numbers<[1], [0], [0], [1], [0, 0, 1, 1], [], []>} : vector<8x48xbf16>, vector<48x2048xbf16>, vector<8x2048xf32> -> vector<8x2048xf32>
    %c0_4 = arith.constant 0 : index
    %c0_5 = arith.constant 0 : index
    %4 = vector.load %arg3[%c0_4, %c0_5] : memref<8x1xf32, #tpu.memory_space<vmem>>, vector<8x1xf32>
    %5 = vector.broadcast %4 : vector<8x1xf32> to vector<8x2048xf32>
    %6 = arith.addf %3, %5 : vector<8x2048xf32>
    %cst_6 = arith.constant 2.000000e-01 : f32
    %7 = vector.broadcast %cst_6 : f32 to vector<8x2048xf32>
    %8 = arith.mulf %7, %6 : vector<8x2048xf32>
    %9 = arith.maximumf %6, %8 : vector<8x2048xf32>
    %10 = arith.truncf %9 : vector<8x2048xf32> to vector<8x2048xbf16>
    %c0_7 = arith.constant 0 : index
    %c0_8 = arith.constant 0 : index
    %c0_9 = arith.constant 0 : index
    %11 = vector.load %arg4[%c0_7, %c0_8, %c0_9] : memref<1x8x2048xbf16, #tpu.memory_space<vmem>>, vector<1x8x2048xbf16>
    %12 = vector.shape_cast %11 : vector<1x8x2048xbf16> to vector<8x2048xbf16>
    %13 = vector.shape_cast %10 : vector<8x2048xbf16> to vector<1x8x2048xbf16>
    tpu.vector_store %arg4[%c0_7, %c0_8, %c0_9], %13 {strides = array<i32>} : memref<1x8x2048xbf16, #tpu.memory_space<vmem>>, vector<1x8x2048xbf16>,
    return
  }
  func.func @transform_0(%arg0: i32) -> (i32, i32, i32) {
    %c0_i32 = arith.constant 0 : i32
    %c0_i32_0 = arith.constant 0 : i32
    %c0_i32_1 = arith.constant 0 : i32
    return %arg0, %c0_i32, %c0_i32_0 : i32, i32, i32
  }
  func.func @transform_1(%arg0: i32) -> (i32, i32) {
    %c0_i32 = arith.constant 0 : i32
    %c0_i32_0 = arith.constant 0 : i32
    %c0_i32_1 = arith.constant 0 : i32
    return %c0_i32, %c0_i32_0 : i32, i32
  }
  func.func @transform_2(%arg0: i32) -> (i32, i32) {
    %c0_i32 = arith.constant 0 : i32
    %c0_i32_0 = arith.constant 0 : i32
    %c0_i32_1 = arith.constant 0 : i32
    return %c0_i32, %c0_i32_0 : i32, i32
  }
  func.func @transform_3(%arg0: i32) -> (i32, i32, i32) {
    %c0_i32 = arith.constant 0 : i32
    %c0_i32_0 = arith.constant 0 : i32
    %c0_i32_1 = arith.constant 0 : i32
    return %arg0, %c0_i32, %c0_i32_0 : i32, i32, i32
  }
}

module attributes {stable_mosaic.version = 11 : i64} {
  func.func @_conv_block_kernel(%arg0: i32, %arg1: memref<1x128x512xbf16, #tpu.memory_space<vmem>>, %arg2: memref<16x128xbf16, #tpu.memory_space<vmem>>, %arg3: memref<16x1xf32, #tpu.memory_space<vmem>>, %arg4: memref<16x1xf32, #tpu.memory_space<vmem>>, %arg5: memref<512x2xf32, #tpu.memory_space<vmem>>, %arg6: memref<2x512xf32, #tpu.memory_space<vmem>>, %arg7: memref<1x16x512xbf16, #tpu.memory_space<vmem>>) attributes {dimension_semantics = [#tpu.dimension_semantics<parallel>], iteration_bounds = array<i64: 2>, scalar_prefetch = 0 : i64, scratch_operands = 0 : i64, tpu.core_type = #tpu.core_type<tc>, window_params = [{transform_indices = @transform_0, window_bounds = array<i64: 1, 128, 512>}, {pipeline_mode = #tpu.pipeline_mode<synchronous>, transform_indices = @transform_1, window_bounds = array<i64: 16, 128>}, {pipeline_mode = #tpu.pipeline_mode<synchronous>, transform_indices = @transform_2, window_bounds = array<i64: 16, 1>}, {pipeline_mode = #tpu.pipeline_mode<synchronous>, transform_indices = @transform_3, window_bounds = array<i64: 16, 1>}, {pipeline_mode = #tpu.pipeline_mode<synchronous>, transform_indices = @transform_4, window_bounds = array<i64: 512, 2>}, {pipeline_mode = #tpu.pipeline_mode<synchronous>, transform_indices = @transform_5, window_bounds = array<i64: 2, 512>}, {transform_indices = @transform_6, window_bounds = array<i64: 1, 16, 512>}]} {
    %c0 = arith.constant 0 : index
    %c0_0 = arith.constant 0 : index
    %0 = vector.load %arg2[%c0, %c0_0] : memref<16x128xbf16, #tpu.memory_space<vmem>>, vector<16x128xbf16>
    %c0_1 = arith.constant 0 : index
    %c0_2 = arith.constant 0 : index
    %c0_3 = arith.constant 0 : index
    %1 = vector.load %arg1[%c0_1, %c0_2, %c0_3] : memref<1x128x512xbf16, #tpu.memory_space<vmem>>, vector<1x128x512xbf16>
    %2 = vector.shape_cast %1 : vector<1x128x512xbf16> to vector<128x512xbf16>
    %cst = arith.constant dense<0.000000e+00> : vector<16x512xf32>
    %3 = tpu.matmul %0, %2, %cst {dimension_numbers = #tpu.dot_dimension_numbers<[1], [0], [0], [1], [0, 0, 1, 1], [], []>} : vector<16x128xbf16>, vector<128x512xbf16>, vector<16x512xf32> -> vector<16x512xf32>
    %c0_4 = arith.constant 0 : index
    %c0_5 = arith.constant 0 : index
    %4 = vector.load %arg5[%c0_4, %c0_5] : memref<512x2xf32, #tpu.memory_space<vmem>>, vector<512x2xf32>
    %c0_6 = arith.constant 0 : index
    %c0_7 = arith.constant 0 : index
    %5 = vector.load %arg6[%c0_6, %c0_7] : memref<2x512xf32, #tpu.memory_space<vmem>>, vector<2x512xf32>
    %cst_8 = arith.constant dense<0.000000e+00> : vector<16x2xf32>
    %6 = tpu.matmul %3, %4, %cst_8 {dimension_numbers = #tpu.dot_dimension_numbers<[1], [0], [0], [1], [0, 0, 1, 1], [], []>} : vector<16x512xf32>, vector<512x2xf32>, vector<16x2xf32> -> vector<16x2xf32>
    %cst_9 = arith.constant 3.906250e-03 : f32
    %7 = vector.broadcast %cst_9 : f32 to vector<16x2xf32>
    %8 = arith.mulf %6, %7 : vector<16x2xf32>
    %9 = arith.mulf %3, %3 : vector<16x512xf32>
    %cst_10 = arith.constant dense<0.000000e+00> : vector<16x2xf32>
    %10 = tpu.matmul %9, %4, %cst_10 {dimension_numbers = #tpu.dot_dimension_numbers<[1], [0], [0], [1], [0, 0, 1, 1], [], []>} : vector<16x512xf32>, vector<512x2xf32>, vector<16x2xf32> -> vector<16x2xf32>
    %cst_11 = arith.constant 3.906250e-03 : f32
    %11 = vector.broadcast %cst_11 : f32 to vector<16x2xf32>
    %12 = arith.mulf %10, %11 : vector<16x2xf32>
    %13 = arith.mulf %8, %8 : vector<16x2xf32>
    %14 = arith.subf %12, %13 : vector<16x2xf32>
    %cst_12 = arith.constant 9.99999974E-6 : f32
    %15 = vector.broadcast %cst_12 : f32 to vector<16x2xf32>
    %16 = arith.addf %14, %15 : vector<16x2xf32>
    %17 = math.rsqrt %16 : vector<16x2xf32>
    %c0_13 = arith.constant 0 : index
    %c0_14 = arith.constant 0 : index
    %18 = vector.load %arg3[%c0_13, %c0_14] : memref<16x1xf32, #tpu.memory_space<vmem>>, vector<16x1xf32>
    %19 = vector.broadcast %18 : vector<16x1xf32> to vector<16x2xf32>
    %20 = arith.mulf %19, %17 : vector<16x2xf32>
    %c0_15 = arith.constant 0 : index
    %c0_16 = arith.constant 0 : index
    %21 = vector.load %arg4[%c0_15, %c0_16] : memref<16x1xf32, #tpu.memory_space<vmem>>, vector<16x1xf32>
    %22 = arith.mulf %20, %8 : vector<16x2xf32>
    %23 = vector.broadcast %21 : vector<16x1xf32> to vector<16x2xf32>
    %24 = arith.subf %23, %22 : vector<16x2xf32>
    %cst_17 = arith.constant dense<0.000000e+00> : vector<16x512xf32>
    %25 = tpu.matmul %20, %5, %cst_17 {dimension_numbers = #tpu.dot_dimension_numbers<[1], [0], [0], [1], [0, 0, 1, 1], [], []>} : vector<16x2xf32>, vector<2x512xf32>, vector<16x512xf32> -> vector<16x512xf32>
    %26 = arith.mulf %3, %25 : vector<16x512xf32>
    %cst_18 = arith.constant dense<0.000000e+00> : vector<16x512xf32>
    %27 = tpu.matmul %24, %5, %cst_18 {dimension_numbers = #tpu.dot_dimension_numbers<[1], [0], [0], [1], [0, 0, 1, 1], [], []>} : vector<16x2xf32>, vector<2x512xf32>, vector<16x512xf32> -> vector<16x512xf32>
    %28 = arith.addf %26, %27 : vector<16x512xf32>
    %cst_19 = arith.constant 2.000000e-01 : f32
    %29 = vector.broadcast %cst_19 : f32 to vector<16x512xf32>
    %30 = arith.mulf %29, %28 : vector<16x512xf32>
    %31 = arith.maximumf %28, %30 : vector<16x512xf32>
    %32 = arith.truncf %31 : vector<16x512xf32> to vector<16x512xbf16>
    %c0_20 = arith.constant 0 : index
    %c0_21 = arith.constant 0 : index
    %c0_22 = arith.constant 0 : index
    %33 = vector.load %arg7[%c0_20, %c0_21, %c0_22] : memref<1x16x512xbf16, #tpu.memory_space<vmem>>, vector<1x16x512xbf16>
    %34 = vector.shape_cast %33 : vector<1x16x512xbf16> to vector<16x512xbf16>
    %35 = vector.shape_cast %32 : vector<16x512xbf16> to vector<1x16x512xbf16>
    tpu.vector_store %arg7[%c0_20, %c0_21, %c0_22], %35 {strides = array<i32>} : memref<1x16x512xbf16, #tpu.memory_space<vmem>>, vector<1x16x512xbf16>,
    return
  }
  func.func @transform_0(%arg0: i32) -> (i32, i32, i32) {
    %c0_i32 = arith.constant 0 : i32
    %c0_i32_0 = arith.constant 0 : i32
    %c0_i32_1 = arith.constant 0 : i32
    return %arg0, %c0_i32, %c0_i32_0 : i32, i32, i32
  }
  func.func @transform_1(%arg0: i32) -> (i32, i32) {
    %c0_i32 = arith.constant 0 : i32
    %c0_i32_0 = arith.constant 0 : i32
    %c0_i32_1 = arith.constant 0 : i32
    return %c0_i32, %c0_i32_0 : i32, i32
  }
  func.func @transform_2(%arg0: i32) -> (i32, i32) {
    %c0_i32 = arith.constant 0 : i32
    %c0_i32_0 = arith.constant 0 : i32
    %c0_i32_1 = arith.constant 0 : i32
    return %c0_i32, %c0_i32_0 : i32, i32
  }
  func.func @transform_3(%arg0: i32) -> (i32, i32) {
    %c0_i32 = arith.constant 0 : i32
    %c0_i32_0 = arith.constant 0 : i32
    %c0_i32_1 = arith.constant 0 : i32
    return %c0_i32, %c0_i32_0 : i32, i32
  }
  func.func @transform_4(%arg0: i32) -> (i32, i32) {
    %c0_i32 = arith.constant 0 : i32
    %c0_i32_0 = arith.constant 0 : i32
    %c0_i32_1 = arith.constant 0 : i32
    return %c0_i32, %c0_i32_0 : i32, i32
  }
  func.func @transform_5(%arg0: i32) -> (i32, i32) {
    %c0_i32 = arith.constant 0 : i32
    %c0_i32_0 = arith.constant 0 : i32
    %c0_i32_1 = arith.constant 0 : i32
    return %c0_i32, %c0_i32_0 : i32, i32
  }
  func.func @transform_6(%arg0: i32) -> (i32, i32, i32) {
    %c0_i32 = arith.constant 0 : i32
    %c0_i32_0 = arith.constant 0 : i32
    %c0_i32_1 = arith.constant 0 : i32
    return %arg0, %c0_i32, %c0_i32_0 : i32, i32, i32
  }
}

module attributes {stable_mosaic.version = 11 : i64} {
  func.func @_conv_block_kernel(%arg0: i32, %arg1: memref<1x256x128xbf16, #tpu.memory_space<vmem>>, %arg2: memref<32x256xbf16, #tpu.memory_space<vmem>>, %arg3: memref<32x1xf32, #tpu.memory_space<vmem>>, %arg4: memref<32x1xf32, #tpu.memory_space<vmem>>, %arg5: memref<128x2xf32, #tpu.memory_space<vmem>>, %arg6: memref<2x128xf32, #tpu.memory_space<vmem>>, %arg7: memref<1x32x128xbf16, #tpu.memory_space<vmem>>) attributes {dimension_semantics = [#tpu.dimension_semantics<parallel>], iteration_bounds = array<i64: 2>, scalar_prefetch = 0 : i64, scratch_operands = 0 : i64, tpu.core_type = #tpu.core_type<tc>, window_params = [{transform_indices = @transform_0, window_bounds = array<i64: 1, 256, 128>}, {pipeline_mode = #tpu.pipeline_mode<synchronous>, transform_indices = @transform_1, window_bounds = array<i64: 32, 256>}, {pipeline_mode = #tpu.pipeline_mode<synchronous>, transform_indices = @transform_2, window_bounds = array<i64: 32, 1>}, {pipeline_mode = #tpu.pipeline_mode<synchronous>, transform_indices = @transform_3, window_bounds = array<i64: 32, 1>}, {pipeline_mode = #tpu.pipeline_mode<synchronous>, transform_indices = @transform_4, window_bounds = array<i64: 128, 2>}, {pipeline_mode = #tpu.pipeline_mode<synchronous>, transform_indices = @transform_5, window_bounds = array<i64: 2, 128>}, {transform_indices = @transform_6, window_bounds = array<i64: 1, 32, 128>}]} {
    %c0 = arith.constant 0 : index
    %c0_0 = arith.constant 0 : index
    %0 = vector.load %arg2[%c0, %c0_0] : memref<32x256xbf16, #tpu.memory_space<vmem>>, vector<32x256xbf16>
    %c0_1 = arith.constant 0 : index
    %c0_2 = arith.constant 0 : index
    %c0_3 = arith.constant 0 : index
    %1 = vector.load %arg1[%c0_1, %c0_2, %c0_3] : memref<1x256x128xbf16, #tpu.memory_space<vmem>>, vector<1x256x128xbf16>
    %2 = vector.shape_cast %1 : vector<1x256x128xbf16> to vector<256x128xbf16>
    %cst = arith.constant dense<0.000000e+00> : vector<32x128xf32>
    %3 = tpu.matmul %0, %2, %cst {dimension_numbers = #tpu.dot_dimension_numbers<[1], [0], [0], [1], [0, 0, 1, 1], [], []>} : vector<32x256xbf16>, vector<256x128xbf16>, vector<32x128xf32> -> vector<32x128xf32>
    %c0_4 = arith.constant 0 : index
    %c0_5 = arith.constant 0 : index
    %4 = vector.load %arg5[%c0_4, %c0_5] : memref<128x2xf32, #tpu.memory_space<vmem>>, vector<128x2xf32>
    %c0_6 = arith.constant 0 : index
    %c0_7 = arith.constant 0 : index
    %5 = vector.load %arg6[%c0_6, %c0_7] : memref<2x128xf32, #tpu.memory_space<vmem>>, vector<2x128xf32>
    %cst_8 = arith.constant dense<0.000000e+00> : vector<32x2xf32>
    %6 = tpu.matmul %3, %4, %cst_8 {dimension_numbers = #tpu.dot_dimension_numbers<[1], [0], [0], [1], [0, 0, 1, 1], [], []>} : vector<32x128xf32>, vector<128x2xf32>, vector<32x2xf32> -> vector<32x2xf32>
    %cst_9 = arith.constant 1.562500e-02 : f32
    %7 = vector.broadcast %cst_9 : f32 to vector<32x2xf32>
    %8 = arith.mulf %6, %7 : vector<32x2xf32>
    %9 = arith.mulf %3, %3 : vector<32x128xf32>
    %cst_10 = arith.constant dense<0.000000e+00> : vector<32x2xf32>
    %10 = tpu.matmul %9, %4, %cst_10 {dimension_numbers = #tpu.dot_dimension_numbers<[1], [0], [0], [1], [0, 0, 1, 1], [], []>} : vector<32x128xf32>, vector<128x2xf32>, vector<32x2xf32> -> vector<32x2xf32>
    %cst_11 = arith.constant 1.562500e-02 : f32
    %11 = vector.broadcast %cst_11 : f32 to vector<32x2xf32>
    %12 = arith.mulf %10, %11 : vector<32x2xf32>
    %13 = arith.mulf %8, %8 : vector<32x2xf32>
    %14 = arith.subf %12, %13 : vector<32x2xf32>
    %cst_12 = arith.constant 9.99999974E-6 : f32
    %15 = vector.broadcast %cst_12 : f32 to vector<32x2xf32>
    %16 = arith.addf %14, %15 : vector<32x2xf32>
    %17 = math.rsqrt %16 : vector<32x2xf32>
    %c0_13 = arith.constant 0 : index
    %c0_14 = arith.constant 0 : index
    %18 = vector.load %arg3[%c0_13, %c0_14] : memref<32x1xf32, #tpu.memory_space<vmem>>, vector<32x1xf32>
    %19 = vector.broadcast %18 : vector<32x1xf32> to vector<32x2xf32>
    %20 = arith.mulf %19, %17 : vector<32x2xf32>
    %c0_15 = arith.constant 0 : index
    %c0_16 = arith.constant 0 : index
    %21 = vector.load %arg4[%c0_15, %c0_16] : memref<32x1xf32, #tpu.memory_space<vmem>>, vector<32x1xf32>
    %22 = arith.mulf %20, %8 : vector<32x2xf32>
    %23 = vector.broadcast %21 : vector<32x1xf32> to vector<32x2xf32>
    %24 = arith.subf %23, %22 : vector<32x2xf32>
    %cst_17 = arith.constant dense<0.000000e+00> : vector<32x128xf32>
    %25 = tpu.matmul %20, %5, %cst_17 {dimension_numbers = #tpu.dot_dimension_numbers<[1], [0], [0], [1], [0, 0, 1, 1], [], []>} : vector<32x2xf32>, vector<2x128xf32>, vector<32x128xf32> -> vector<32x128xf32>
    %26 = arith.mulf %3, %25 : vector<32x128xf32>
    %cst_18 = arith.constant dense<0.000000e+00> : vector<32x128xf32>
    %27 = tpu.matmul %24, %5, %cst_18 {dimension_numbers = #tpu.dot_dimension_numbers<[1], [0], [0], [1], [0, 0, 1, 1], [], []>} : vector<32x2xf32>, vector<2x128xf32>, vector<32x128xf32> -> vector<32x128xf32>
    %28 = arith.addf %26, %27 : vector<32x128xf32>
    %cst_19 = arith.constant 2.000000e-01 : f32
    %29 = vector.broadcast %cst_19 : f32 to vector<32x128xf32>
    %30 = arith.mulf %29, %28 : vector<32x128xf32>
    %31 = arith.maximumf %28, %30 : vector<32x128xf32>
    %32 = arith.truncf %31 : vector<32x128xf32> to vector<32x128xbf16>
    %c0_20 = arith.constant 0 : index
    %c0_21 = arith.constant 0 : index
    %c0_22 = arith.constant 0 : index
    %33 = vector.load %arg7[%c0_20, %c0_21, %c0_22] : memref<1x32x128xbf16, #tpu.memory_space<vmem>>, vector<1x32x128xbf16>
    %34 = vector.shape_cast %33 : vector<1x32x128xbf16> to vector<32x128xbf16>
    %35 = vector.shape_cast %32 : vector<32x128xbf16> to vector<1x32x128xbf16>
    tpu.vector_store %arg7[%c0_20, %c0_21, %c0_22], %35 {strides = array<i32>} : memref<1x32x128xbf16, #tpu.memory_space<vmem>>, vector<1x32x128xbf16>,
    return
  }
  func.func @transform_0(%arg0: i32) -> (i32, i32, i32) {
    %c0_i32 = arith.constant 0 : i32
    %c0_i32_0 = arith.constant 0 : i32
    %c0_i32_1 = arith.constant 0 : i32
    return %arg0, %c0_i32, %c0_i32_0 : i32, i32, i32
  }
  func.func @transform_1(%arg0: i32) -> (i32, i32) {
    %c0_i32 = arith.constant 0 : i32
    %c0_i32_0 = arith.constant 0 : i32
    %c0_i32_1 = arith.constant 0 : i32
    return %c0_i32, %c0_i32_0 : i32, i32
  }
  func.func @transform_2(%arg0: i32) -> (i32, i32) {
    %c0_i32 = arith.constant 0 : i32
    %c0_i32_0 = arith.constant 0 : i32
    %c0_i32_1 = arith.constant 0 : i32
    return %c0_i32, %c0_i32_0 : i32, i32
  }
  func.func @transform_3(%arg0: i32) -> (i32, i32) {
    %c0_i32 = arith.constant 0 : i32
    %c0_i32_0 = arith.constant 0 : i32
    %c0_i32_1 = arith.constant 0 : i32
    return %c0_i32, %c0_i32_0 : i32, i32
  }
  func.func @transform_4(%arg0: i32) -> (i32, i32) {
    %c0_i32 = arith.constant 0 : i32
    %c0_i32_0 = arith.constant 0 : i32
    %c0_i32_1 = arith.constant 0 : i32
    return %c0_i32, %c0_i32_0 : i32, i32
  }
  func.func @transform_5(%arg0: i32) -> (i32, i32) {
    %c0_i32 = arith.constant 0 : i32
    %c0_i32_0 = arith.constant 0 : i32
    %c0_i32_1 = arith.constant 0 : i32
    return %c0_i32, %c0_i32_0 : i32, i32
  }
  func.func @transform_6(%arg0: i32) -> (i32, i32, i32) {
    %c0_i32 = arith.constant 0 : i32
    %c0_i32_0 = arith.constant 0 : i32
    %c0_i32_1 = arith.constant 0 : i32
    return %arg0, %c0_i32, %c0_i32_0 : i32, i32, i32
  }
}

module attributes {stable_mosaic.version = 11 : i64} {
  func.func @_conv_block_kernel(%arg0: i32, %arg1: memref<1x512x32xbf16, #tpu.memory_space<vmem>>, %arg2: memref<64x512xbf16, #tpu.memory_space<vmem>>, %arg3: memref<64x1xf32, #tpu.memory_space<vmem>>, %arg4: memref<64x1xf32, #tpu.memory_space<vmem>>, %arg5: memref<32x2xf32, #tpu.memory_space<vmem>>, %arg6: memref<2x32xf32, #tpu.memory_space<vmem>>, %arg7: memref<64x32xf32, #tpu.memory_space<vmem>>, %arg8: memref<1x1xf32, #tpu.memory_space<vmem>>, %arg9: memref<1x1x2xf32, #tpu.memory_space<vmem>>) attributes {dimension_semantics = [#tpu.dimension_semantics<parallel>], iteration_bounds = array<i64: 2>, scalar_prefetch = 0 : i64, scratch_operands = 0 : i64, tpu.core_type = #tpu.core_type<tc>, window_params = [{transform_indices = @transform_0, window_bounds = array<i64: 1, 512, 32>}, {pipeline_mode = #tpu.pipeline_mode<synchronous>, transform_indices = @transform_1, window_bounds = array<i64: 64, 512>}, {pipeline_mode = #tpu.pipeline_mode<synchronous>, transform_indices = @transform_2, window_bounds = array<i64: 64, 1>}, {pipeline_mode = #tpu.pipeline_mode<synchronous>, transform_indices = @transform_3, window_bounds = array<i64: 64, 1>}, {pipeline_mode = #tpu.pipeline_mode<synchronous>, transform_indices = @transform_4, window_bounds = array<i64: 32, 2>}, {pipeline_mode = #tpu.pipeline_mode<synchronous>, transform_indices = @transform_5, window_bounds = array<i64: 2, 32>}, {pipeline_mode = #tpu.pipeline_mode<synchronous>, transform_indices = @transform_6, window_bounds = array<i64: 64, 32>}, {pipeline_mode = #tpu.pipeline_mode<synchronous>, transform_indices = @transform_7, window_bounds = array<i64: 1, 1>}, {transform_indices = @transform_8, window_bounds = array<i64: 1, 1, 2>}]} {
    %c0 = arith.constant 0 : index
    %c0_0 = arith.constant 0 : index
    %0 = vector.load %arg2[%c0, %c0_0] : memref<64x512xbf16, #tpu.memory_space<vmem>>, vector<64x512xbf16>
    %c0_1 = arith.constant 0 : index
    %c0_2 = arith.constant 0 : index
    %c0_3 = arith.constant 0 : index
    %1 = vector.load %arg1[%c0_1, %c0_2, %c0_3] : memref<1x512x32xbf16, #tpu.memory_space<vmem>>, vector<1x512x32xbf16>
    %2 = vector.shape_cast %1 : vector<1x512x32xbf16> to vector<512x32xbf16>
    %cst = arith.constant dense<0.000000e+00> : vector<64x32xf32>
    %3 = tpu.matmul %0, %2, %cst {dimension_numbers = #tpu.dot_dimension_numbers<[1], [0], [0], [1], [0, 0, 1, 1], [], []>} : vector<64x512xbf16>, vector<512x32xbf16>, vector<64x32xf32> -> vector<64x32xf32>
    %c0_4 = arith.constant 0 : index
    %c0_5 = arith.constant 0 : index
    %4 = vector.load %arg5[%c0_4, %c0_5] : memref<32x2xf32, #tpu.memory_space<vmem>>, vector<32x2xf32>
    %c0_6 = arith.constant 0 : index
    %c0_7 = arith.constant 0 : index
    %5 = vector.load %arg6[%c0_6, %c0_7] : memref<2x32xf32, #tpu.memory_space<vmem>>, vector<2x32xf32>
    %cst_8 = arith.constant dense<0.000000e+00> : vector<64x2xf32>
    %6 = tpu.matmul %3, %4, %cst_8 {dimension_numbers = #tpu.dot_dimension_numbers<[1], [0], [0], [1], [0, 0, 1, 1], [], []>} : vector<64x32xf32>, vector<32x2xf32>, vector<64x2xf32> -> vector<64x2xf32>
    %cst_9 = arith.constant 6.250000e-02 : f32
    %7 = vector.broadcast %cst_9 : f32 to vector<64x2xf32>
    %8 = arith.mulf %6, %7 : vector<64x2xf32>
    %9 = arith.mulf %3, %3 : vector<64x32xf32>
    %cst_10 = arith.constant dense<0.000000e+00> : vector<64x2xf32>
    %10 = tpu.matmul %9, %4, %cst_10 {dimension_numbers = #tpu.dot_dimension_numbers<[1], [0], [0], [1], [0, 0, 1, 1], [], []>} : vector<64x32xf32>, vector<32x2xf32>, vector<64x2xf32> -> vector<64x2xf32>
    %cst_11 = arith.constant 6.250000e-02 : f32
    %11 = vector.broadcast %cst_11 : f32 to vector<64x2xf32>
    %12 = arith.mulf %10, %11 : vector<64x2xf32>
    %13 = arith.mulf %8, %8 : vector<64x2xf32>
    %14 = arith.subf %12, %13 : vector<64x2xf32>
    %cst_12 = arith.constant 9.99999974E-6 : f32
    %15 = vector.broadcast %cst_12 : f32 to vector<64x2xf32>
    %16 = arith.addf %14, %15 : vector<64x2xf32>
    %17 = math.rsqrt %16 : vector<64x2xf32>
    %c0_13 = arith.constant 0 : index
    %c0_14 = arith.constant 0 : index
    %18 = vector.load %arg3[%c0_13, %c0_14] : memref<64x1xf32, #tpu.memory_space<vmem>>, vector<64x1xf32>
    %19 = vector.broadcast %18 : vector<64x1xf32> to vector<64x2xf32>
    %20 = arith.mulf %19, %17 : vector<64x2xf32>
    %c0_15 = arith.constant 0 : index
    %c0_16 = arith.constant 0 : index
    %21 = vector.load %arg4[%c0_15, %c0_16] : memref<64x1xf32, #tpu.memory_space<vmem>>, vector<64x1xf32>
    %22 = arith.mulf %20, %8 : vector<64x2xf32>
    %23 = vector.broadcast %21 : vector<64x1xf32> to vector<64x2xf32>
    %24 = arith.subf %23, %22 : vector<64x2xf32>
    %cst_17 = arith.constant dense<0.000000e+00> : vector<64x32xf32>
    %25 = tpu.matmul %20, %5, %cst_17 {dimension_numbers = #tpu.dot_dimension_numbers<[1], [0], [0], [1], [0, 0, 1, 1], [], []>} : vector<64x2xf32>, vector<2x32xf32>, vector<64x32xf32> -> vector<64x32xf32>
    %26 = arith.mulf %3, %25 : vector<64x32xf32>
    %cst_18 = arith.constant dense<0.000000e+00> : vector<64x32xf32>
    %27 = tpu.matmul %24, %5, %cst_18 {dimension_numbers = #tpu.dot_dimension_numbers<[1], [0], [0], [1], [0, 0, 1, 1], [], []>} : vector<64x2xf32>, vector<2x32xf32>, vector<64x32xf32> -> vector<64x32xf32>
    %28 = arith.addf %26, %27 : vector<64x32xf32>
    %cst_19 = arith.constant 2.000000e-01 : f32
    %29 = vector.broadcast %cst_19 : f32 to vector<64x32xf32>
    %30 = arith.mulf %29, %28 : vector<64x32xf32>
    %31 = arith.maximumf %28, %30 : vector<64x32xf32>
    %c0_20 = arith.constant 0 : index
    %c0_21 = arith.constant 0 : index
    %32 = vector.load %arg7[%c0_20, %c0_21] : memref<64x32xf32, #tpu.memory_space<vmem>>, vector<64x32xf32>
    %33 = arith.mulf %31, %32 : vector<64x32xf32>
    %cst_22 = arith.constant dense<0.000000e+00> : vector<64x2xf32>
    %34 = tpu.matmul %33, %4, %cst_22 {dimension_numbers = #tpu.dot_dimension_numbers<[1], [0], [0], [1], [0, 0, 1, 1], [], []>} : vector<64x32xf32>, vector<32x2xf32>, vector<64x2xf32> -> vector<64x2xf32>
    %cst_23 = arith.constant dense<0.000000e+00> : vector<2xf32>
    %35 = vector.multi_reduction <add>, %34, %cst_23 [0] : vector<64x2xf32> to vector<2xf32>
    %36 = vector.shape_cast %35 : vector<2xf32> to vector<1x2xf32>
    %c0_24 = arith.constant 0 : index
    %c0_25 = arith.constant 0 : index
    %37 = vector.load %arg8[%c0_24, %c0_25] : memref<1x1xf32, #tpu.memory_space<vmem>>, vector<1x1xf32>
    %38 = vector.broadcast %37 : vector<1x1xf32> to vector<1x2xf32>
    %39 = arith.addf %36, %38 : vector<1x2xf32>
    %c0_26 = arith.constant 0 : index
    %c0_27 = arith.constant 0 : index
    %c0_28 = arith.constant 0 : index
    %40 = vector.load %arg9[%c0_26, %c0_27, %c0_28] : memref<1x1x2xf32, #tpu.memory_space<vmem>>, vector<1x1x2xf32>
    %41 = vector.shape_cast %40 : vector<1x1x2xf32> to vector<1x2xf32>
    %42 = vector.shape_cast %39 : vector<1x2xf32> to vector<1x1x2xf32>
    tpu.vector_store %arg9[%c0_26, %c0_27, %c0_28], %42 {strides = array<i32>} : memref<1x1x2xf32, #tpu.memory_space<vmem>>, vector<1x1x2xf32>,
    return
  }
  func.func @transform_0(%arg0: i32) -> (i32, i32, i32) {
    %c0_i32 = arith.constant 0 : i32
    %c0_i32_0 = arith.constant 0 : i32
    %c0_i32_1 = arith.constant 0 : i32
    return %arg0, %c0_i32, %c0_i32_0 : i32, i32, i32
  }
  func.func @transform_1(%arg0: i32) -> (i32, i32) {
    %c0_i32 = arith.constant 0 : i32
    %c0_i32_0 = arith.constant 0 : i32
    %c0_i32_1 = arith.constant 0 : i32
    return %c0_i32, %c0_i32_0 : i32, i32
  }
  func.func @transform_2(%arg0: i32) -> (i32, i32) {
    %c0_i32 = arith.constant 0 : i32
    %c0_i32_0 = arith.constant 0 : i32
    %c0_i32_1 = arith.constant 0 : i32
    return %c0_i32, %c0_i32_0 : i32, i32
  }
  func.func @transform_3(%arg0: i32) -> (i32, i32) {
    %c0_i32 = arith.constant 0 : i32
    %c0_i32_0 = arith.constant 0 : i32
    %c0_i32_1 = arith.constant 0 : i32
    return %c0_i32, %c0_i32_0 : i32, i32
  }
  func.func @transform_4(%arg0: i32) -> (i32, i32) {
    %c0_i32 = arith.constant 0 : i32
    %c0_i32_0 = arith.constant 0 : i32
    %c0_i32_1 = arith.constant 0 : i32
    return %c0_i32, %c0_i32_0 : i32, i32
  }
  func.func @transform_5(%arg0: i32) -> (i32, i32) {
    %c0_i32 = arith.constant 0 : i32
    %c0_i32_0 = arith.constant 0 : i32
    %c0_i32_1 = arith.constant 0 : i32
    return %c0_i32, %c0_i32_0 : i32, i32
  }
  func.func @transform_6(%arg0: i32) -> (i32, i32) {
    %c0_i32 = arith.constant 0 : i32
    %c0_i32_0 = arith.constant 0 : i32
    %c0_i32_1 = arith.constant 0 : i32
    return %c0_i32, %c0_i32_0 : i32, i32
  }
  func.func @transform_7(%arg0: i32) -> (i32, i32) {
    %c0_i32 = arith.constant 0 : i32
    %c0_i32_0 = arith.constant 0 : i32
    %c0_i32_1 = arith.constant 0 : i32
    return %c0_i32, %c0_i32_0 : i32, i32
  }
  func.func @transform_8(%arg0: i32) -> (i32, i32, i32) {
    %c0_i32 = arith.constant 0 : i32
    %c0_i32_0 = arith.constant 0 : i32
    %c0_i32_1 = arith.constant 0 : i32
    return %arg0, %c0_i32, %c0_i32_0 : i32, i32, i32
  }
}

</mosaic_0001>

<bundles_post_ra>
// kernel: critic_forward.4
= control target key start
LH: loop header
LB: loop body
LE: loop exit
PB: predicated region body
PF: predicated region fallthrough
CT: control target
= control target key end

     0   :  { %s1081_s12 = smov 0   ;;  %s1213_s0 = inlined_call_operand.vmem [shape: bf16[2,48,2048], index: 0, kind: input, shape index: {}]   ;;  %s1214_s1 = inlined_call_operand.vmem [shape: bf16[8,48], index: 1, kind: input, shape index: {}]   ;;  %s1215_s2 = inlined_call_operand.vmem [shape: f32[8,1], index: 2, kind: input, shape index: {}]   ;;  %s1216_s3 = inlined_call_operand.vmem [shape: bf16[2,8,2048], index: 3, kind: output, shape index: {}]  }
   0x1 LB: > { %s958_s13 = sadd.s32 4294967295, %s1058_s12   ;;  %p962_p0 = scmp.ge.s32.totalorder %s1058_s12, 1  ;;  %s1058_s12 = sphi %s1081_s12, %s13_s12  }
   0x2   : > { %p137_p1 = scmp.lt.s32.totalorder %s1058_s12, 3 }
   0x4   : > { %p138_p2 = pnand %p962_p0, %p137_p1 }
   0x5   : > { %p161_p3 = scmp.lt.s32.totalorder (!%p138_p2), %s958_s13, 1  ;;  %v221_v0 = vld [vmem:[%s1215_s2] sm:$0xff] (!%p138_p2)  ;;  %v1060_v1 = vmov (!%p138_p2), 0   ;;  %vm467_vm0 = vcmask (!%p138_p2), 392192  }
   0x6   : > { %141 = sbr.rel (%p138_p2) target bundleno = 291 (0x123), region = 32  ;;  %503 = vmatprep.mubr.bf16.mxu0 (!%p138_p2), %v1060_v1  ;;  %544 = vmatprep.mubr.bf16.mxu1 (!%p138_p2), %v1060_v1  ;;  %v1126_v36 = vld [vmem:[%s1214_s1] sm:$0xf] (!%p138_p2) }
   0x7   : > { %1051 = vset.pattern.permute.xlu0 (!%p138_p2), %v1060_v1 }
   0x8   : > { %224 = vperm.xlu0 (!%p138_p2), %1051, %v221_v0  }
   0xd   : > { %s1218_s13 = smov (!%p161_p3, %s958_s13), 1 }
   0xe   : > { %s1041_s16 = smul.u32 384, %s1218_s13  ;;  %s1032_s22 = sshll.u32 %s1218_s13, 6 }
   0xf   : > { %s1188_s25 = scalar_lea.vmem %s1216_s3, %s1032_s22 }
  0x10   : > { %s1101_s19 = scalar_lea.vmem %s1213_s0, %s1041_s16 }
  0x11   : > { %v173_v2 = vld [vmem:[%s1101_s19] sm:$0xff]  ;;  %v174_v4 = vld [vmem:[%s1101_s19 + $0x8] sm:$0xff]  ;;  %v175_v24 = vld [vmem:[%s1101_s19 + $0x10] sm:$0xff] }
  0x12   : > { %v181_v3 = vld [vmem:[%s1101_s19 + $0x40] sm:$0xff]  ;;  %v182_v6 = vld [vmem:[%s1101_s19 + $0x48] sm:$0xff]  ;;  %v183_v25 = vld [vmem:[%s1101_s19 + $0x50] sm:$0xff] }
  0x13   : > { %v967_v5 = vcombine.high %v173_v2, %v181_v3  ;;  %v966_v7 = vcombine.low %v173_v2, %v181_v3  ;;  %v189_v8 = vld [vmem:[%s1101_s19 + $0x80] sm:$0xff]  ;;  %v969_v10 = vcombine.high %v174_v4, %v182_v6  ;;  %v968_v11 = vcombine.low %v174_v4, %v182_v6  ;;  %v190_v13 = vld [vmem:[%s1101_s19 + $0x88] sm:$0xff]  ;;  %v176_v26 = vld [vmem:[%s1101_s19 + $0x18] sm:$0xff] }
  0x14   : > { %v197_v9 = vld [vmem:[%s1101_s19 + $0xc0] sm:$0xff]  ;;  %v198_v14 = vld [vmem:[%s1101_s19 + $0xc8] sm:$0xff]  ;;  %v184_v27 = vld [vmem:[%s1101_s19 + $0x58] sm:$0xff]  ;;  %v971_v30 = vcombine.high %v175_v24, %v183_v25  ;;  %v970_v37 = vcombine.low %v175_v24, %v183_v25 }
  0x15   : > { %v983_v12 = vcombine.high %v189_v8, %v197_v9  ;;  %v205_v15 = vld [vmem:[%s1101_s19 + $0x100] sm:$0xff]  ;;  %471 = vmatprep.subr.bf16.mxu0 %v967_v5  ;;  %v985_v16 = vcombine.high %v190_v13, %v198_v14  ;;  %v206_v18 = vld [vmem:[%s1101_s19 + $0x108] sm:$0xff]  ;;  %512 = vmatprep.subr.bf16.mxu1 %v969_v10  ;;  %v982_v20 = vcombine.low %v189_v8, %v197_v9  ;;  %v191_v32 = vld [vmem:[%s1101_s19 + $0x90] sm:$0xff] }
  0x16   : > { %v213_v17 = vld [vmem:[%s1101_s19 + $0x140] sm:$0xff]  ;;  %v214_v19 = vld [vmem:[%s1101_s19 + $0x148] sm:$0xff]  ;;  %472 = vmatpush1.bf16.msra.mxu0 %v966_v7  ;;  %513 = vmatpush1.bf16.msra.mxu1 %v968_v11  ;;  %v984_v21 = vcombine.low %v190_v13, %v198_v14  ;;  %v973_v31 = vcombine.high %v176_v26, %v184_v27  ;;  %v199_v33 = vld [vmem:[%s1101_s19 + $0xd0] sm:$0xff]  ;;  %v972_v38 = vcombine.low %v176_v26, %v184_v27 }
  0x17   : > { %473 = vmatprep.subr.bf16.mxu0 %v983_v12  ;;  %v999_v22 = vcombine.high %v205_v15, %v213_v17  ;;  %514 = vmatprep.subr.bf16.mxu1 %v985_v16  ;;  %v1001_v23 = vcombine.high %v206_v18, %v214_v19  ;;  %v998_v28 = vcombine.low %v205_v15, %v213_v17  ;;  %v192_v34 = vld [vmem:[%s1101_s19 + $0x98] sm:$0xff]  ;;  %v207_v41 = vld [vmem:[%s1101_s19 + $0x110] sm:$0xff]  ;;  %v177_v49 = vld [vmem:[%s1101_s19 + $0x20] sm:$0xff] }
  0x18   : > { %v1000_v29 = vcombine.low %v206_v18, %v214_v19  ;;  %v200_v35 = vld [vmem:[%s1101_s19 + $0xd8] sm:$0xff]  ;;  %v987_v39 = vcombine.high %v191_v32, %v199_v33  ;;  %v215_v42 = vld [vmem:[%s1101_s19 + $0x150] sm:$0xff]  ;;  %v986_v45 = vcombine.low %v191_v32, %v199_v33  ;;  %v185_v50 = vld [vmem:[%s1101_s19 + $0x60] sm:$0xff] }
  0x19   : > { %v989_v40 = vcombine.high %v192_v34, %v200_v35  ;;  %v208_v43 = vld [vmem:[%s1101_s19 + $0x118] sm:$0xff]  ;;  %v988_v46 = vcombine.low %v192_v34, %v200_v35  ;;  %v1003_v47 = vcombine.high %v207_v41, %v215_v42  ;;  %v178_v51 = vld [vmem:[%s1101_s19 + $0x28] sm:$0xff]  ;;  %v1002_v53 = vcombine.low %v207_v41, %v215_v42  ;;  %v193_v57 = vld [vmem:[%s1101_s19 + $0xa0] sm:$0xff] }
  0x1a   : > { %474 = vmatpush1.bf16.msra.mxu0 %v982_v20  ;;  %515 = vmatpush1.bf16.msra.mxu1 %v984_v21  ;;  %v216_v44 = vld [vmem:[%s1101_s19 + $0x158] sm:$0xff]  ;;  %v186_v52 = vld [vmem:[%s1101_s19 + $0x68] sm:$0xff]  ;;  %v975_v55 = vcombine.high %v177_v49, %v185_v50  ;;  %v201_v58 = vld [vmem:[%s1101_s19 + $0xe0] sm:$0xff]  ;;  %v974_v61 = vcombine.low %v177_v49, %v185_v50 }
  0x1b   : > { %475 = vmatprep.subr.bf16.mxu0 %v999_v22  ;;  %516 = vmatprep.subr.bf16.mxu1 %v1001_v23  ;;  %v1005_v48 = vcombine.high %v208_v43, %v216_v44  ;;  %v1004_v54 = vcombine.low %v208_v43, %v216_v44  ;;  %v977_v56 = vcombine.high %v178_v51, %v186_v52  ;;  %v194_v59 = vld [vmem:[%s1101_s19 + $0xa8] sm:$0xff]  ;;  %v209_v2 = vld [vmem:[%s1101_s19 + $0x120] sm:$0xff]  ;;  %v179_v10 = vld [vmem:[%s1101_s19 + $0x30] sm:$0xff] }
  0x1c   : > { %v202_v60 = vld [vmem:[%s1101_s19 + $0xe8] sm:$0xff]  ;;  %v976_v62 = vcombine.low %v178_v51, %v186_v52  ;;  %v991_v63 = vcombine.high %v193_v57, %v201_v58  ;;  %v217_v3 = vld [vmem:[%s1101_s19 + $0x160] sm:$0xff]  ;;  %v990_v6 = vcombine.low %v193_v57, %v201_v58  ;;  %v187_v11 = vld [vmem:[%s1101_s19 + $0x70] sm:$0xff] }
  0x1d   : > { %v993_v0 = vcombine.high %v194_v59, %v202_v60  ;;  %v210_v4 = vld [vmem:[%s1101_s19 + $0x128] sm:$0xff]  ;;  %v992_v7 = vcombine.low %v194_v59, %v202_v60  ;;  %v1007_v8 = vcombine.high %v209_v2, %v217_v3  ;;  %v180_v12 = vld [vmem:[%s1101_s19 + $0x38] sm:$0xff]  ;;  %v1006_v14 = vcombine.low %v209_v2, %v217_v3  ;;  %v195_v18 = vld [vmem:[%s1101_s19 + $0xb0] sm:$0xff] }
  0x1e   : > { %476 = vmatpush1.bf16.msra.mxu0 %v998_v28  ;;  %517 = vmatpush1.bf16.msra.mxu1 %v1000_v29  ;;  %v218_v5 = vld [vmem:[%s1101_s19 + $0x168] sm:$0xff]  ;;  %v188_v13 = vld [vmem:[%s1101_s19 + $0x78] sm:$0xff]  ;;  %v979_v16 = vcombine.high %v179_v10, %v187_v11  ;;  %v203_v19 = vld [vmem:[%s1101_s19 + $0xf0] sm:$0xff]  ;;  %v978_v22 = vcombine.low %v179_v10, %v187_v11 }
  0x1f   : > { %553 = vmatprep.subr.bf16.mxu0 %v971_v30  ;;  %594 = vmatprep.subr.bf16.mxu1 %v973_v31  ;;  %v1009_v9 = vcombine.high %v210_v4, %v218_v5  ;;  %v1008_v15 = vcombine.low %v210_v4, %v218_v5  ;;  %v981_v17 = vcombine.high %v180_v12, %v188_v13  ;;  %v196_v20 = vld [vmem:[%s1101_s19 + $0xb8] sm:$0xff]  ;;  %v211_v26 = vld [vmem:[%s1101_s19 + $0x130] sm:$0xff] }
  0x20   : > { %v204_v21 = vld [vmem:[%s1101_s19 + $0xf8] sm:$0xff]  ;;  %v980_v23 = vcombine.low %v180_v12, %v188_v13  ;;  %v995_v24 = vcombine.high %v195_v18, %v203_v19  ;;  %v219_v27 = vld [vmem:[%s1101_s19 + $0x170] sm:$0xff]  ;;  %v994_v30 = vcombine.low %v195_v18, %v203_v19 }
  0x21   : > { %1014 = vmatmul.mubr.msk.bf16.vlgmr.msra.gmra.mrb[0].mxu0 %vm467_vm0, %v1126_v36  ;;  %1015 = vmatmul.mubr.msk.bf16.vlgmr.msra.gmra.mrb[0].mxu1 %vm467_vm0, %v1126_v36  ;;  %v997_v25 = vcombine.high %v196_v20, %v204_v21  ;;  %v212_v28 = vld [vmem:[%s1101_s19 + $0x138] sm:$0xff]  ;;  %v996_v31 = vcombine.low %v196_v20, %v204_v21  ;;  %v1011_v32 = vcombine.high %v211_v26, %v219_v27 }
  0x22   : > { %554 = vmatpush1.bf16.msra.mxu0 %v970_v37  ;;  %595 = vmatpush1.bf16.msra.mxu1 %v972_v38  ;;  %v220_v29 = vld [vmem:[%s1101_s19 + $0x178] sm:$0xff]  ;;  %v1010_v34 = vcombine.low %v211_v26, %v219_v27 }
  0x23   : > { %555 = vmatprep.subr.bf16.mxu0 %v987_v39  ;;  %596 = vmatprep.subr.bf16.mxu1 %v989_v40  ;;  %v1013_v33 = vcombine.high %v212_v28, %v220_v29  ;;  %v1012_v35 = vcombine.low %v212_v28, %v220_v29 }
  0x24   : > { %585 = vmatprep.mubr.bf16.mxu0 %v1060_v1  ;;  %626 = vmatprep.mubr.bf16.mxu1 %v1060_v1 }
  0x26   : > { %556 = vmatpush1.bf16.msra.mxu0 %v986_v45  ;;  %597 = vmatpush1.bf16.msra.mxu1 %v988_v46 }
  0x27   : > { %557 = vmatprep.subr.bf16.mxu0 %v1003_v47  ;;  %598 = vmatprep.subr.bf16.mxu1 %v1005_v48 }
  0x2a   : > { %558 = vmatpush1.bf16.msra.mxu0 %v1002_v53  ;;  %599 = vmatpush1.bf16.msra.mxu1 %v1004_v54 }
  0x2b   : > { %635 = vmatprep.subr.bf16.mxu0 %v975_v55  ;;  %676 = vmatprep.subr.bf16.mxu1 %v977_v56 }
  0x2d   : > { %1016 = vmatmul.mubr.msk.bf16.vlgmr.msra.gmra.mrb[4].mxu0 %vm467_vm0, %v1126_v36  ;;  %1017 = vmatmul.mubr.msk.bf16.vlgmr.msra.gmra.mrb[4].mxu1 %vm467_vm0, %v1126_v36 }
  0x2e   : > { %636 = vmatpush1.bf16.msra.mxu0 %v974_v61  ;;  %677 = vmatpush1.bf16.msra.mxu1 %v976_v62 }
  0x2f   : > { %637 = vmatprep.subr.bf16.mxu0 %v991_v63  ;;  %678 = vmatprep.subr.bf16.mxu1 %v993_v0 }
  0x30   : > { %667 = vmatprep.mubr.bf16.mxu0 %v1060_v1  ;;  %708 = vmatprep.mubr.bf16.mxu1 %v1060_v1 }
  0x32   : > { %638 = vmatpush1.bf16.msra.mxu0 %v990_v6  ;;  %679 = vmatpush1.bf16.msra.mxu1 %v992_v7 }
  0x33   : > { %639 = vmatprep.subr.bf16.mxu0 %v1007_v8  ;;  %680 = vmatprep.subr.bf16.mxu1 %v1009_v9 }
  0x36   : > { %640 = vmatpush1.bf16.msra.mxu0 %v1006_v14  ;;  %681 = vmatpush1.bf16.msra.mxu1 %v1008_v15 }
  0x37   : > { %717 = vmatprep.subr.bf16.mxu0 %v979_v16  ;;  %758 = vmatprep.subr.bf16.mxu1 %v981_v17 }
  0x39   : > { %1018 = vmatmul.mubr.msk.bf16.vlgmr.msra.gmra.mrb[8].mxu0 %vm467_vm0, %v1126_v36  ;;  %1019 = vmatmul.mubr.msk.bf16.vlgmr.msra.gmra.mrb[8].mxu1 %vm467_vm0, %v1126_v36 }
  0x3a   : > { %718 = vmatpush1.bf16.msra.mxu0 %v978_v22  ;;  %759 = vmatpush1.bf16.msra.mxu1 %v980_v23 }
  0x3b   : > { %719 = vmatprep.subr.bf16.mxu0 %v995_v24  ;;  %760 = vmatprep.subr.bf16.mxu1 %v997_v25 }
  0x3c   : > { %749 = vmatprep.mubr.bf16.mxu0 %v1060_v1  ;;  %790 = vmatprep.mubr.bf16.mxu1 %v1060_v1 }
  0x3e   : > { %720 = vmatpush1.bf16.msra.mxu0 %v994_v30  ;;  %761 = vmatpush1.bf16.msra.mxu1 %v996_v31 }
  0x3f   : > { %721 = vmatprep.subr.bf16.mxu0 %v1011_v32  ;;  %762 = vmatprep.subr.bf16.mxu1 %v1013_v33 }
  0x42   : > { %722 = vmatpush1.bf16.msra.mxu0 %v1010_v34  ;;  %763 = vmatpush1.bf16.msra.mxu1 %v1012_v35 }
  0x45   : > { %1020 = vmatmul.mubr.msk.bf16.vlgmr.msra.gmra.mrb[12].mxu0 %vm467_vm0, %v1126_v36  ;;  %1021 = vmatmul.mubr.msk.bf16.vlgmr.msra.gmra.mrb[12].mxu1 %vm467_vm0, %v1126_v36 }
  0x87   : > { %v1178_v37 = vpop.permute.xlu0 %224 }
  0xf4   : > { %v505_v38 = vpop.f32.mrb[0].mxu0  ;;  %v546_v39 = vpop.f32.mrb[0].mxu1 }
  0xf5   : > { %v506_v1 = vadd.f32 %v505_v38, %v1178_v37  ;;  %v507_v40 = vpop.f32.mrb[1].mxu0  ;;  %v547_v41 = vadd.f32 %v546_v39, %v1178_v37  ;;  %v548_v43 = vpop.f32.mrb[1].mxu1 }
  0xf6   : > { %v508_v42 = vadd.f32 %v507_v40, %v1178_v37  ;;  %v509_v44 = vpop.f32.mrb[2].mxu0  ;;  %v549_v46 = vadd.f32 %v548_v43, %v1178_v37  ;;  %v550_v47 = vpop.f32.mrb[2].mxu1 }
  0xf7   : > { %v799_v45 = vmul.f32 0.2, %v506_v1  ;;  %v510_v48 = vpop.f32.mrb[3].mxu0  ;;  %v801_v49 = vmul.f32 0.2, %v547_v41  ;;  %v551_v50 = vpop.f32.mrb[3].mxu1 }
  0xf8   : > { %v800_v36 = vmul.f32 0.2, %v508_v42  ;;  %v802_v52 = vmul.f32 0.2, %v549_v46 }
  0xf9   : > { %v815_v51 = vmax.f32 %v506_v1, %v799_v45  ;;  %v817_v53 = vmax.f32 %v547_v41, %v801_v49 }
  0xfa   : > { %v816_v54 = vmax.f32 %v508_v42, %v800_v36  ;;  %v818_v55 = vmax.f32 %v549_v46, %v802_v52 }
  0xfc   : > { %v1033_v56 = vpack.c.bf16 %v816_v54, %v815_v51  ;;  %v1034_v57 = vpack.c.bf16 %v818_v55, %v817_v53 }
  0xfe   : > { %895 = vst [vmem:[%s1188_s25] sm:$0xff] %v1033_v56  ;;  %896 = vst [vmem:[%s1188_s25 + $0x8] sm:$0xff] %v1034_v57 }
 0x100   : > { %v587_v58 = vpop.f32.mrb[4].mxu0  ;;  %v628_v60 = vpop.f32.mrb[4].mxu1 }
 0x101   : > { %v588_v59 = vadd.f32 %v587_v58, %v1178_v37  ;;  %v589_v61 = vpop.f32.mrb[5].mxu0  ;;  %v629_v62 = vadd.f32 %v628_v60, %v1178_v37  ;;  %v630_v0 = vpop.f32.mrb[5].mxu1 }
 0x102   : > { %v590_v63 = vadd.f32 %v589_v61, %v1178_v37  ;;  %v591_v2 = vpop.f32.mrb[6].mxu0  ;;  %v631_v4 = vadd.f32 %v630_v0, %v1178_v37  ;;  %v632_v5 = vpop.f32.mrb[6].mxu1 }
 0x103   : > { %v803_v3 = vmul.f32 0.2, %v588_v59  ;;  %v592_v6 = vpop.f32.mrb[7].mxu0  ;;  %v805_v7 = vmul.f32 0.2, %v629_v62  ;;  %v633_v9 = vpop.f32.mrb[7].mxu1 }
 0x104   : > { %v804_v8 = vmul.f32 0.2, %v590_v63  ;;  %v806_v11 = vmul.f32 0.2, %v631_v4 }
 0x105   : > { %v819_v10 = vmax.f32 %v588_v59, %v803_v3  ;;  %v821_v12 = vmax.f32 %v629_v62, %v805_v7 }
 0x106   : > { %v820_v13 = vmax.f32 %v590_v63, %v804_v8  ;;  %v822_v14 = vmax.f32 %v631_v4, %v806_v11 }
 0x108   : > { %v1035_v15 = vpack.c.bf16 %v820_v13, %v819_v10  ;;  %v1036_v16 = vpack.c.bf16 %v822_v14, %v821_v12 }
 0x10a   : > { %897 = vst [vmem:[%s1188_s25 + $0x10] sm:$0xff] %v1035_v15  ;;  %898 = vst [vmem:[%s1188_s25 + $0x18] sm:$0xff] %v1036_v16 }
 0x10c   : > { %v669_v17 = vpop.f32.mrb[8].mxu0  ;;  %v710_v19 = vpop.f32.mrb[8].mxu1 }
 0x10d   : > { %v670_v18 = vadd.f32 %v669_v17, %v1178_v37  ;;  %v671_v20 = vpop.f32.mrb[9].mxu0  ;;  %v711_v21 = vadd.f32 %v710_v19, %v1178_v37  ;;  %v712_v23 = vpop.f32.mrb[9].mxu1 }
 0x10e   : > { %v672_v22 = vadd.f32 %v671_v20, %v1178_v37  ;;  %v673_v24 = vpop.f32.mrb[10].mxu0  ;;  %v713_v26 = vadd.f32 %v712_v23, %v1178_v37  ;;  %v714_v27 = vpop.f32.mrb[10].mxu1 }
 0x10f   : > { %v807_v25 = vmul.f32 0.2, %v670_v18  ;;  %v674_v28 = vpop.f32.mrb[11].mxu0  ;;  %v809_v29 = vmul.f32 0.2, %v711_v21  ;;  %v715_v31 = vpop.f32.mrb[11].mxu1 }
 0x110   : > { %v808_v30 = vmul.f32 0.2, %v672_v22  ;;  %v810_v33 = vmul.f32 0.2, %v713_v26 }
 0x111   : > { %v823_v32 = vmax.f32 %v670_v18, %v807_v25  ;;  %v825_v34 = vmax.f32 %v711_v21, %v809_v29 }
 0x112   : > { %v824_v35 = vmax.f32 %v672_v22, %v808_v30  ;;  %v826_v38 = vmax.f32 %v713_v26, %v810_v33 }
 0x114   : > { %v1037_v1 = vpack.c.bf16 %v824_v35, %v823_v32  ;;  %v1038_v39 = vpack.c.bf16 %v826_v38, %v825_v34 }
 0x116   : > { %899 = vst [vmem:[%s1188_s25 + $0x20] sm:$0xff] %v1037_v1  ;;  %900 = vst [vmem:[%s1188_s25 + $0x28] sm:$0xff] %v1038_v39 }
 0x118   : > { %v751_v40 = vpop.f32.mrb[12].mxu0  ;;  %v792_v42 = vpop.f32.mrb[12].mxu1 }
 0x119   : > { %v752_v41 = vadd.f32 %v751_v40, %v1178_v37  ;;  %v753_v43 = vpop.f32.mrb[13].mxu0  ;;  %v793_v44 = vadd.f32 %v792_v42, %v1178_v37  ;;  %v794_v46 = vpop.f32.mrb[13].mxu1 }
 0x11a   : > { %v754_v45 = vadd.f32 %v753_v43, %v1178_v37  ;;  %v755_v47 = vpop.f32.mrb[14].mxu0  ;;  %v795_v49 = vadd.f32 %v794_v46, %v1178_v37  ;;  %v796_v36 = vpop.f32.mrb[14].mxu1 }
 0x11b   : > { %v811_v48 = vmul.f32 0.2, %v752_v41  ;;  %v756_v50 = vpop.f32.mrb[15].mxu0  ;;  %v813_v51 = vmul.f32 0.2, %v793_v44  ;;  %v797_v53 = vpop.f32.mrb[15].mxu1 }
 0x11c   : > { %v812_v52 = vmul.f32 0.2, %v754_v45  ;;  %v814_v55 = vmul.f32 0.2, %v795_v49 }
 0x11d   : > { %v827_v54 = vmax.f32 %v752_v41, %v811_v48  ;;  %v829_v56 = vmax.f32 %v793_v44, %v813_v51 }
 0x11e   : > { %v828_v57 = vmax.f32 %v754_v45, %v812_v52  ;;  %v830_v58 = vmax.f32 %v795_v49, %v814_v55 }
 0x120   : > { %v1039_v59 = vpack.c.bf16 %v828_v57, %v827_v54  ;;  %v1040_v60 = vpack.c.bf16 %v830_v58, %v829_v56 }
 0x122   : > { %901 = vst [vmem:[%s1188_s25 + $0x30] sm:$0xff] %v1039_v59  ;;  %902 = vst [vmem:[%s1188_s25 + $0x38] sm:$0xff] %v1040_v60 }
 0x123 PF: > { %s13_s12 = sadd.s32 1, %s1058_s12  }
 0x124   : > { %p10_p4 = scmp.ge.s32.totalorder %s13_s12, 4  }
 0x126   :  { %12 = sbr.rel (!%p10_p4) target bundleno = 1 (0x1), region = 62 }

// kernel: critic_forward.5
= control target key start
LH: loop header
LB: loop body
LE: loop exit
PB: predicated region body
PF: predicated region fallthrough
CT: control target
= control target key end

     0   :  { %s1880_s21 = smov 0   ;;  %s2357_s0 = inlined_call_operand.vmem [shape: bf16[2,128,512], index: 0, kind: input, shape index: {}]   ;;  %s2358_s1 = inlined_call_operand.vmem [shape: bf16[16,128], index: 1, kind: input, shape index: {}]   ;;  %s2359_s2 = inlined_call_operand.vmem [shape: f32[16,1], index: 2, kind: input, shape index: {}]   ;;  %s2360_s3 = inlined_call_operand.vmem [shape: f32[16,1], index: 3, kind: input, shape index: {}]   ;;  %s2361_s4 = inlined_call_operand.vmem [shape: f32[512,2], index: 4, kind: input, shape index: {}]   ;;  %s2362_s5 = inlined_call_operand.vmem [shape: f32[2,512], index: 5, kind: input, shape index: {}]   ;;  %s2363_s6 = inlined_call_operand.vmem [shape: bf16[2,16,512], index: 6, kind: output, shape index: {}]  }
   0x1 LB: > { %s1417_s22 = sadd.s32 4294967295, %s1840_s21   ;;  %p1421_p0 = scmp.ge.s32.totalorder %s1840_s21, 1  ;;  %s1840_s21 = sphi %s1880_s21, %s16_s21  }
   0x2   : > { %p212_p1 = scmp.lt.s32.totalorder %s1840_s21, 3 }
   0x4   : > { %p213_p2 = pnand %p1421_p0, %p212_p1 }
   0x5   : > { %p242_p3 = scmp.lt.s32.totalorder (!%p213_p2), %s1417_s22, 1  ;;  %v1842_v0 = vmov (!%p213_p2), 0   ;;  %v555_v31 = vld [vmem:[%s2361_s4 + $0x80] sm:$0xff] (!%p213_p2)  ;;  %v556_v32 = vld [vmem:[%s2361_s4 + $0x88] sm:$0xff] (!%p213_p2)  ;;  %v557_v43 = vld [vmem:[%s2361_s4 + $0x90] sm:$0xff] (!%p213_p2)  ;;  %vm979_vm0 = vcmask (!%p213_p2), 1041408  }
   0x6   : > { %216 = sbr.rel (%p213_p2) target bundleno = 765 (0x2fd), region = 44  ;;  %485 = vmatprep.mubr.bf16.mxu0 (!%p213_p2), %v1842_v0  ;;  %528 = vmatprep.mubr.bf16.mxu1 (!%p213_p2), %v1842_v0  ;;  %v587_v33 = vld [vmem:[%s2361_s4 + $0x180] sm:$0xff] (!%p213_p2)  ;;  %v588_v34 = vld [vmem:[%s2361_s4 + $0x188] sm:$0xff] (!%p213_p2)  ;;  %v1946_v39 = vpack.c.bf16 (!%p213_p2), %v556_v32, %v555_v31  ;;  %v558_v44 = vld [vmem:[%s2361_s4 + $0x98] sm:$0xff] (!%p213_p2)  ;;  %vm972_vm1 = vcmask (!%p213_p2), 15360  }
   0x7   : > { %1778 = vset.pattern.permute.xlu0 (!%p213_p2), %v1842_v0  ;;  %1779 = vset.pattern.permute.xlu1 (!%p213_p2), %v1842_v0  ;;  %v539_v35 = vld [vmem:[%s2361_s4] sm:$0xff] (!%p213_p2)  ;;  %v540_v38 = vld [vmem:[%s2361_s4 + $0x8] sm:$0xff] (!%p213_p2)  ;;  %v1948_v40 = vpack.c.bf16 (!%p213_p2), %v588_v34, %v587_v33  ;;  %v589_v45 = vld [vmem:[%s2361_s4 + $0x190] sm:$0xff] (!%p213_p2)  ;;  %v1983_v52 = vpack.c.bf16 (!%p213_p2), %v558_v44, %v557_v43 }
   0x8   : > { %v571_v41 = vld [vmem:[%s2361_s4 + $0x100] sm:$0xff] (!%p213_p2)  ;;  %v572_v42 = vld [vmem:[%s2361_s4 + $0x108] sm:$0xff] (!%p213_p2)  ;;  %v590_v46 = vld [vmem:[%s2361_s4 + $0x198] sm:$0xff] (!%p213_p2)  ;;  %v1971_v48 = vpack.c.bf16 (!%p213_p2), %v540_v38, %v539_v35 }
   0x9   : > { %v1828_v47 = vld [vmem:[%s2358_s1] sm:$0xff] (!%p213_p2)   ;;  %v1973_v49 = vpack.c.bf16 (!%p213_p2), %v572_v42, %v571_v41  ;;  %v541_v50 = vld [vmem:[%s2361_s4 + $0x10] sm:$0xff] (!%p213_p2)  ;;  %v542_v51 = vld [vmem:[%s2361_s4 + $0x18] sm:$0xff] (!%p213_p2)  ;;  %v1985_v53 = vpack.c.bf16 (!%p213_p2), %v590_v46, %v589_v45 }
   0xa   : > { %v573_v54 = vld [vmem:[%s2361_s4 + $0x110] sm:$0xff] (!%p213_p2)  ;;  %v574_v55 = vld [vmem:[%s2361_s4 + $0x118] sm:$0xff] (!%p213_p2)  ;;  %v559_v56 = vld [vmem:[%s2361_s4 + $0xa0] sm:$0xff] (!%p213_p2)  ;;  %v2007_v60 = vpack.c.bf16 (!%p213_p2), %v542_v51, %v541_v50 }
   0xb   : > { %v560_v57 = vld [vmem:[%s2361_s4 + $0xa8] sm:$0xff] (!%p213_p2)  ;;  %v591_v58 = vld [vmem:[%s2361_s4 + $0x1a0] sm:$0xff] (!%p213_p2)  ;;  %v2009_v61 = vpack.c.bf16 (!%p213_p2), %v574_v55, %v573_v54  ;;  %v598_v31 = vld [vmem:[%s2361_s4 + $0x1d8] sm:$0xff] (!%p213_p2) }
   0xc   : > { %v592_v59 = vld [vmem:[%s2361_s4 + $0x1a8] sm:$0xff] (!%p213_p2)  ;;  %v543_v62 = vld [vmem:[%s2361_s4 + $0x20] sm:$0xff] (!%p213_p2)  ;;  %v2019_v0 = vpack.c.bf16 (!%p213_p2), %v560_v57, %v559_v56  ;;  %v549_v34 = vld [vmem:[%s2361_s4 + $0x50] sm:$0xff] (!%p213_p2) }
   0xd   : > { %s2365_s22 = smov (!%p242_p3, %s1417_s22), 1  ;;  %v544_v63 = vld [vmem:[%s2361_s4 + $0x28] sm:$0xff]  ;;  %v550_v35 = vld [vmem:[%s2361_s4 + $0x58] sm:$0xff]  ;;  %v581_v38 = vld [vmem:[%s2361_s4 + $0x150] sm:$0xff] }
   0xe   : > { %s1481_s23 = sshll.u32 %s2365_s22, 8  ;;  %v582_v41 = vld [vmem:[%s2361_s4 + $0x158] sm:$0xff]  ;;  %v567_v42 = vld [vmem:[%s2361_s4 + $0xe0] sm:$0xff]  ;;  %v568_v43 = vld [vmem:[%s2361_s4 + $0xe8] sm:$0xff]  ;;  %v2151_v46 = vpack.c.bf16 %v550_v35, %v549_v34  ;;  %v1844_v34 = vmov 0.0   ;;  %s1482_s11 = sshll.u32 %s2365_s22, 5 }
   0xf   : > { %s1894_s26 = scalar_lea.vmem %s2357_s0, %s1481_s23  ;;  %v599_v44 = vld [vmem:[%s2361_s4 + $0x1e0] sm:$0xff]  ;;  %v600_v45 = vld [vmem:[%s2361_s4 + $0x1e8] sm:$0xff]  ;;  %v2163_v54 = vpack.c.bf16 %v568_v43, %v567_v42  ;;  %s251_s14 = scalar_lea.vmem %s2363_s6, %s1482_s11 }
  0x10   : > { %v1780_v1 = vld [vmem:[%s1894_s26 + $0x4] ss:$16 sps:$4 sm:$0xff]   ;;  %v1782_v2 = vld [vmem:[%s1894_s26 + $0xc] ss:$16 sps:$4 sm:$0xff]   ;;  %v1784_v3 = vld [vmem:[%s1894_s26] ss:$16 sps:$4 sm:$0xff]   ;;  %v2165_v55 = vpack.c.bf16 %v600_v45, %v599_v44 }
  0x11   : > { %453 = vmatprep.subr.bf16.mxu0 %v1780_v1  ;;  %v1785_v4 = vld [vmem:[%s1894_s26 + $0x8] ss:$16 sps:$4 sm:$0xff]   ;;  %496 = vmatprep.subr.bf16.mxu1 %v1782_v2  ;;  %v1786_v5 = vld [vmem:[%s1894_s26 + $0x24] ss:$16 sps:$4 sm:$0xff]   ;;  %v1788_v6 = vld [vmem:[%s1894_s26 + $0x2c] ss:$16 sps:$4 sm:$0xff]   ;;  %v2021_v1 = vpack.c.bf16 %v592_v59, %v591_v58 }
  0x12   : > { %454 = vmatpush1.bf16.msra.mxu0 %v1784_v3  ;;  %497 = vmatpush1.bf16.msra.mxu1 %v1785_v4  ;;  %v1790_v7 = vld [vmem:[%s1894_s26 + $0x20] ss:$16 sps:$4 sm:$0xff]   ;;  %v1791_v8 = vld [vmem:[%s1894_s26 + $0x28] ss:$16 sps:$4 sm:$0xff]   ;;  %v1792_v9 = vld [vmem:[%s1894_s26 + $0x44] ss:$16 sps:$4 sm:$0xff]  }
  0x13   : > { %455 = vmatprep.subr.bf16.mxu0 %v1786_v5  ;;  %498 = vmatprep.subr.bf16.mxu1 %v1788_v6  ;;  %v1794_v10 = vld [vmem:[%s1894_s26 + $0x4c] ss:$16 sps:$4 sm:$0xff]   ;;  %v1796_v11 = vld [vmem:[%s1894_s26 + $0x40] ss:$16 sps:$4 sm:$0xff]   ;;  %v1797_v12 = vld [vmem:[%s1894_s26 + $0x48] ss:$16 sps:$4 sm:$0xff]  }
  0x14   : > { %v1798_v13 = vld [vmem:[%s1894_s26 + $0x64] ss:$16 sps:$4 sm:$0xff]   ;;  %v1800_v14 = vld [vmem:[%s1894_s26 + $0x6c] ss:$16 sps:$4 sm:$0xff]   ;;  %v1802_v15 = vld [vmem:[%s1894_s26 + $0x60] ss:$16 sps:$4 sm:$0xff]  }
  0x15   : > { %v1803_v16 = vld [vmem:[%s1894_s26 + $0x68] ss:$16 sps:$4 sm:$0xff]   ;;  %v1804_v17 = vld [vmem:[%s1894_s26 + $0x84] ss:$16 sps:$4 sm:$0xff]   ;;  %v1806_v18 = vld [vmem:[%s1894_s26 + $0x8c] ss:$16 sps:$4 sm:$0xff]  }
  0x16   : > { %456 = vmatpush1.bf16.msra.mxu0 %v1790_v7  ;;  %499 = vmatpush1.bf16.msra.mxu1 %v1791_v8  ;;  %v1808_v19 = vld [vmem:[%s1894_s26 + $0x80] ss:$16 sps:$4 sm:$0xff]   ;;  %v1809_v20 = vld [vmem:[%s1894_s26 + $0x88] ss:$16 sps:$4 sm:$0xff]   ;;  %v1810_v21 = vld [vmem:[%s1894_s26 + $0xa4] ss:$16 sps:$4 sm:$0xff]   ;;  %v2043_v8 = vpack.c.bf16 %v544_v63, %v543_v62 }
  0x17   : > { %457 = vmatprep.subr.bf16.mxu0 %v1792_v9  ;;  %500 = vmatprep.subr.bf16.mxu1 %v1794_v10  ;;  %v1812_v22 = vld [vmem:[%s1894_s26 + $0xac] ss:$16 sps:$4 sm:$0xff]   ;;  %v1814_v23 = vld [vmem:[%s1894_s26 + $0xa0] ss:$16 sps:$4 sm:$0xff]   ;;  %v1815_v24 = vld [vmem:[%s1894_s26 + $0xa8] ss:$16 sps:$4 sm:$0xff]  }
  0x18   : > { %v1816_v25 = vld [vmem:[%s1894_s26 + $0xc4] ss:$16 sps:$4 sm:$0xff]   ;;  %v1818_v26 = vld [vmem:[%s1894_s26 + $0xcc] ss:$16 sps:$4 sm:$0xff]   ;;  %v1820_v27 = vld [vmem:[%s1894_s26 + $0xc0] ss:$16 sps:$4 sm:$0xff]  }
  0x19   : > { %v1821_v28 = vld [vmem:[%s1894_s26 + $0xc8] ss:$16 sps:$4 sm:$0xff]   ;;  %v1822_v29 = vld [vmem:[%s1894_s26 + $0xe4] ss:$16 sps:$4 sm:$0xff]   ;;  %v1824_v30 = vld [vmem:[%s1894_s26 + $0xec] ss:$16 sps:$4 sm:$0xff]  }
  0x1a   : > { %458 = vmatpush1.bf16.msra.mxu0 %v1796_v11  ;;  %501 = vmatpush1.bf16.msra.mxu1 %v1797_v12  ;;  %v1826_v36 = vld [vmem:[%s1894_s26 + $0xe0] ss:$16 sps:$4 sm:$0xff]   ;;  %v1827_v37 = vld [vmem:[%s1894_s26 + $0xe8] ss:$16 sps:$4 sm:$0xff]  }
  0x1b   : > { %459 = vmatprep.subr.bf16.mxu0 %v1798_v13  ;;  %502 = vmatprep.subr.bf16.mxu1 %v1800_v14  ;;  %v575_v2 = vld [vmem:[%s2361_s4 + $0x120] sm:$0xff]  ;;  %v576_v3 = vld [vmem:[%s2361_s4 + $0x128] sm:$0xff]  ;;  %v561_v4 = vld [vmem:[%s2361_s4 + $0xb0] sm:$0xff] }
  0x1c   : > { %v562_v5 = vld [vmem:[%s2361_s4 + $0xb8] sm:$0xff]  ;;  %v593_v6 = vld [vmem:[%s2361_s4 + $0x1b0] sm:$0xff]  ;;  %v2045_v9 = vpack.c.bf16 %v576_v3, %v575_v2  ;;  %v551_v50 = vld [vmem:[%s2361_s4 + $0x60] sm:$0xff] }
  0x1d   : > { %v594_v7 = vld [vmem:[%s2361_s4 + $0x1b8] sm:$0xff]  ;;  %v545_v10 = vld [vmem:[%s2361_s4 + $0x30] sm:$0xff]  ;;  %v2055_v12 = vpack.c.bf16 %v562_v5, %v561_v4  ;;  %v552_v51 = vld [vmem:[%s2361_s4 + $0x68] sm:$0xff] }
  0x1e   : > { %460 = vmatpush1.bf16.msra.mxu0 %v1802_v15  ;;  %503 = vmatpush1.bf16.msra.mxu1 %v1803_v16  ;;  %v546_v11 = vld [vmem:[%s2361_s4 + $0x38] sm:$0xff]  ;;  %v2057_v13 = vpack.c.bf16 %v594_v7, %v593_v6  ;;  %v577_v14 = vld [vmem:[%s2361_s4 + $0x130] sm:$0xff]  ;;  %v563_v16 = vld [vmem:[%s2361_s4 + $0xc0] sm:$0xff]  ;;  %v2187_v2 = vpack.c.bf16 %v552_v51, %v551_v50 }
  0x1f   : > { %461 = vmatprep.subr.bf16.mxu0 %v1804_v17  ;;  %504 = vmatprep.subr.bf16.mxu1 %v1806_v18  ;;  %v578_v15 = vld [vmem:[%s2361_s4 + $0x138] sm:$0xff]  ;;  %v564_v17 = vld [vmem:[%s2361_s4 + $0xc8] sm:$0xff]  ;;  %v595_v18 = vld [vmem:[%s2361_s4 + $0x1c0] sm:$0xff] }
  0x20   : > { %v583_v56 = vld [vmem:[%s2361_s4 + $0x160] sm:$0xff]  ;;  %v584_v57 = vld [vmem:[%s2361_s4 + $0x168] sm:$0xff]  ;;  %v569_v58 = vld [vmem:[%s2361_s4 + $0xf0] sm:$0xff] }
  0x21   : > { %v570_v59 = vld [vmem:[%s2361_s4 + $0xf8] sm:$0xff]  ;;  %v601_v62 = vld [vmem:[%s2361_s4 + $0x1f0] sm:$0xff]  ;;  %v2189_v3 = vpack.c.bf16 %v584_v57, %v583_v56 }
  0x22   : > { %462 = vmatpush1.bf16.msra.mxu0 %v1808_v19  ;;  %505 = vmatpush1.bf16.msra.mxu1 %v1809_v20  ;;  %v596_v19 = vld [vmem:[%s2361_s4 + $0x1c8] sm:$0xff]  ;;  %v2079_v20 = vpack.c.bf16 %v546_v11, %v545_v10  ;;  %v602_v63 = vld [vmem:[%s2361_s4 + $0x1f8] sm:$0xff]  ;;  %v553_v4 = vld [vmem:[%s2361_s4 + $0x70] sm:$0xff]  ;;  %v2196_v5 = vpack.c.bf16 %v570_v59, %v569_v58 }
  0x23   : > { %463 = vmatprep.subr.bf16.mxu0 %v1810_v21  ;;  %506 = vmatprep.subr.bf16.mxu1 %v1812_v22  ;;  %v2081_v21 = vpack.c.bf16 %v578_v15, %v577_v14  ;;  %v547_v22 = vld [vmem:[%s2361_s4 + $0x40] sm:$0xff]  ;;  %v2198_v6 = vpack.c.bf16 %v602_v63, %v601_v62  ;;  %v554_v7 = vld [vmem:[%s2361_s4 + $0x78] sm:$0xff]  ;;  %v585_v10 = vld [vmem:[%s2361_s4 + $0x170] sm:$0xff] }
  0x24   : > { %v586_v11 = vld [vmem:[%s2361_s4 + $0x178] sm:$0xff]  ;;  %v2211_v14 = vpack.c.bf16 %v554_v7, %v553_v4 }
  0x25   : > { %v2213_v15 = vpack.c.bf16 %v586_v11, %v585_v10 }
  0x26   : > { %464 = vmatpush1.bf16.msra.mxu0 %v1814_v23  ;;  %507 = vmatpush1.bf16.msra.mxu1 %v1815_v24  ;;  %v548_v23 = vld [vmem:[%s2361_s4 + $0x48] sm:$0xff]  ;;  %v2091_v24 = vpack.c.bf16 %v564_v17, %v563_v16  ;;  %v924_v16 = vld [vmem:[%s2359_s2] sm:$0xff] }
  0x27   : > { %465 = vmatprep.subr.bf16.mxu0 %v1816_v25  ;;  %508 = vmatprep.subr.bf16.mxu1 %v1818_v26  ;;  %v2093_v25 = vpack.c.bf16 %v596_v19, %v595_v18  ;;  %v579_v26 = vld [vmem:[%s2361_s4 + $0x140] sm:$0xff]  ;;  %v2115_v32 = vpack.c.bf16 %v548_v23, %v547_v22  ;;  %v925_v18 = vld [vmem:[%s2359_s2 + $0x8] sm:$0xff] }
  0x28   : > { %v938_v17 = vld [vmem:[%s2360_s3] sm:$0xff]  ;;  %928 = vperm.xlu0 %1778, %v924_v16  }
  0x29   : > { %944 = vperm.xlu1 %1779, %v938_v17  }
  0x2a   : > { %466 = vmatpush1.bf16.msra.mxu0 %v1820_v27  ;;  %509 = vmatpush1.bf16.msra.mxu1 %v1821_v28  ;;  %v580_v27 = vld [vmem:[%s2361_s4 + $0x148] sm:$0xff]  ;;  %v565_v28 = vld [vmem:[%s2361_s4 + $0xd0] sm:$0xff] }
  0x2b   : > { %467 = vmatprep.subr.bf16.mxu0 %v1822_v29  ;;  %510 = vmatprep.subr.bf16.mxu1 %v1824_v30  ;;  %v566_v29 = vld [vmem:[%s2361_s4 + $0xd8] sm:$0xff]  ;;  %v597_v30 = vld [vmem:[%s2361_s4 + $0x1d0] sm:$0xff]  ;;  %v2117_v33 = vpack.c.bf16 %v580_v27, %v579_v26 }
  0x2c   : > { %933 = vperm.xlu0 %1778, %v925_v18  }
  0x2e   : > { %468 = vmatpush1.bf16.msra.mxu0 %v1826_v36  ;;  %511 = vmatpush1.bf16.msra.mxu1 %v1827_v37  ;;  %v2127_v36 = vpack.c.bf16 %v566_v29, %v565_v28  ;;  %v2129_v37 = vpack.c.bf16 %v598_v31, %v597_v30 }
  0x2f   : > { %1640 = vmatprep.subr.bf16.mxu0 %v1946_v39  ;;  %1672 = vmatprep.subr.bf16.mxu1 %v1948_v40 }
  0x31   : > { %486 = vmatmul.mubr.bf16.vlgmr.msra.gmra.mrb[0].mxu0 %v1828_v47  ;;  %529 = vmatmul.mubr.bf16.vlgmr.msra.gmra.mrb[0].mxu1 %v1828_v47  ;;  %v2153_v47 = vpack.c.bf16 %v582_v41, %v581_v38 }
  0x32   : > { %1642 = vmatpush3.bf16.msra.mxu0 %v1971_v48  ;;  %1674 = vmatpush3.bf16.msra.mxu1 %v1973_v49 }
  0x33   : > { %1644 = vmatprep.subr.bf16.mxu0 %v1983_v52  ;;  %1676 = vmatprep.subr.bf16.mxu1 %v1985_v53 }
  0x36   : > { %1646 = vmatpush3.bf16.msra.mxu0 %v2007_v60  ;;  %1678 = vmatpush3.bf16.msra.mxu1 %v2009_v61 }
  0x37   : > { %1648 = vmatprep.subr.bf16.mxu0 %v2019_v0  ;;  %1680 = vmatprep.subr.bf16.mxu1 %v2021_v1 }
  0x3a   : > { %1650 = vmatpush3.bf16.msra.mxu0 %v2043_v8  ;;  %1682 = vmatpush3.bf16.msra.mxu1 %v2045_v9 }
  0x3b   : > { %1652 = vmatprep.subr.bf16.mxu0 %v2055_v12  ;;  %1684 = vmatprep.subr.bf16.mxu1 %v2057_v13 }
  0x3e   : > { %1654 = vmatpush3.bf16.msra.mxu0 %v2079_v20  ;;  %1686 = vmatpush3.bf16.msra.mxu1 %v2081_v21 }
  0x3f   : > { %1656 = vmatprep.subr.bf16.mxu0 %v2091_v24  ;;  %1688 = vmatprep.subr.bf16.mxu1 %v2093_v25 }
  0x42   : > { %1658 = vmatpush3.bf16.msra.mxu0 %v2115_v32  ;;  %1690 = vmatpush3.bf16.msra.mxu1 %v2117_v33 }
  0x43   : > { %1660 = vmatprep.subr.bf16.mxu0 %v2127_v36  ;;  %1692 = vmatprep.subr.bf16.mxu1 %v2129_v37 }
  0x46   : > { %1662 = vmatpush3.bf16.msra.mxu0 %v2151_v46  ;;  %1694 = vmatpush3.bf16.msra.mxu1 %v2153_v47 }
  0x47   : > { %1664 = vmatprep.subr.bf16.mxu0 %v2163_v54  ;;  %1696 = vmatprep.subr.bf16.mxu1 %v2165_v55 }
  0x4a   : > { %1666 = vmatpush3.bf16.msra.mxu0 %v2187_v2  ;;  %1698 = vmatpush3.bf16.msra.mxu1 %v2189_v3 }
  0x4b   : > { %1668 = vmatprep.subr.bf16.mxu0 %v2196_v5  ;;  %1700 = vmatprep.subr.bf16.mxu1 %v2198_v6 }
  0x4e   : > { %1670 = vmatpush3.bf16.msra.mxu0 %v2211_v14  ;;  %1702 = vmatpush3.bf16.msra.mxu1 %v2213_v15 }
  0x4f   : > { %1704 = vmatprep.subr.bf16.mxu0 %v1946_v39  ;;  %1736 = vmatprep.subr.bf16.mxu1 %v1948_v40  ;;  %v939_v39 = vld [vmem:[%s2360_s3 + $0x8] sm:$0xff] }
  0x50   : > { %949 = vperm.xlu1 %1779, %v939_v39  }
 0x104   : > { %v2233_v40 = vpop.f32.mrb[0].mxu0  ;;  %v2235_v19 = vpop.f32.mrb[0].mxu1 }
 0x105   : > { %v2237_v22 = vpop.f32.mrb[1].mxu0  ;;  %v2239_v23 = vpop.f32.mrb[1].mxu1 }
 0x106   : > { %v2241_v26 = vpop.f32.mrb[2].mxu0  ;;  %v2243_v27 = vpop.f32.mrb[2].mxu1  ;;  %668 = vmatprep.mubr.f32.mxu0 %v2237_v22  ;;  %743 = vmatprep.mubr.f32.mxu1 %v2239_v23  ;;  %v757_v30 = vmul.f32 %v2237_v22, %v2237_v22  ;;  %v759_v31 = vmul.f32 %v2239_v23, %v2239_v23 }
 0x107   : > { %v2247_v28 = vpop.f32.mrb[3].mxu0  ;;  %v2249_v29 = vpop.f32.mrb[3].mxu1  ;;  %669 = vmatmul.mubr.f32.vlgmr.msra.gmra.mrb[4].mxu0 %v2233_v40  ;;  %744 = vmatmul.mubr.f32.vlgmr.msra.gmra.mrb[4].mxu1 %v2235_v19 }
 0x108   : > { %1706 = vmatpush3.bf16.msra.mxu0 %v1971_v48  ;;  %1738 = vmatpush3.bf16.msra.mxu1 %v1973_v49  ;;  %v756_v48 = vmul.f32 %v2233_v40, %v2233_v40  ;;  %v758_v49 = vmul.f32 %v2235_v19, %v2235_v19 }
 0x109   : > { %673 = vmatprep.mubr.f32.mxu0 %v2247_v28  ;;  %748 = vmatprep.mubr.f32.mxu1 %v2249_v29 }
 0x10a   : > { %1708 = vmatprep.subr.bf16.mxu0 %v1983_v52  ;;  %1740 = vmatprep.subr.bf16.mxu1 %v1985_v53  ;;  %v761_v52 = vmul.f32 %v2247_v28, %v2247_v28  ;;  %v763_v53 = vmul.f32 %v2249_v29, %v2249_v29 }
 0x10b   : > { %674 = vmatmul.mubr.f32.gmra.mrb[6].mxu0 %v2241_v26  ;;  %749 = vmatmul.mubr.f32.gmra.mrb[6].mxu1 %v2243_v27 }
 0x10c   : > { %1710 = vmatpush3.bf16.msra.mxu0 %v2007_v60  ;;  %1742 = vmatpush3.bf16.msra.mxu1 %v2009_v61  ;;  %v760_v60 = vmul.f32 %v2241_v26, %v2241_v26  ;;  %v762_v61 = vmul.f32 %v2243_v27, %v2243_v27 }
 0x10d   : > { %828 = vmatprep.mubr.f32.mxu0 %v757_v30  ;;  %903 = vmatprep.mubr.f32.mxu1 %v759_v31 }
 0x10e   : > { %1712 = vmatprep.subr.bf16.mxu0 %v2019_v0  ;;  %1744 = vmatprep.subr.bf16.mxu1 %v2021_v1  ;;  %v1843_v0 = vmov 1983009808  }
 0x10f   : > { %v957_v1 = vunpack.c.l.s4 %v1843_v0 }
 0x110   : > { %1714 = vmatpush3.bf16.msra.mxu0 %v2043_v8  ;;  %1746 = vmatpush3.bf16.msra.mxu1 %v2045_v9  ;;  %v959_v8 = vlaneseq }
 0x111   : > { %1716 = vmatprep.subr.bf16.mxu0 %v2055_v12  ;;  %1748 = vmatprep.subr.bf16.mxu1 %v2057_v13  ;;  %v958_v9 = vunpack.c.0.s8 %v957_v1  ;;  %v603_v13 = vld [vmem:[%s2362_s5] sm:$0xff]  ;;  %v945_v1 = vpop.permute.xlu1 %944 }
 0x112   : > { %v960_v12 = vshrl.u32 %v959_v8, 7 }
 0x114   : > { %1718 = vmatpush3.bf16.msra.mxu0 %v2079_v20  ;;  %1750 = vmatpush3.bf16.msra.mxu1 %v2081_v21  ;;  %v961_v20 = vsub.s32 %v958_v9, %v960_v12  ;;  %v955_v21 = vcombine.high %v603_v13, %v603_v13 }
 0x115   : > { %1720 = vmatprep.subr.bf16.mxu0 %v2091_v24  ;;  %1752 = vmatprep.subr.bf16.mxu1 %v2093_v25 }
 0x116   : > { %v2306_v24 = vrot.slane %v603_v13, %v961_v20  ;;  %v2308_v25 = vrot.slane %v955_v21, %v961_v20  ;;  %v950_v13 = vpop.permute.xlu1 %949 }
 0x118   : > { %1722 = vmatpush3.bf16.msra.mxu0 %v2115_v32  ;;  %1754 = vmatpush3.bf16.msra.mxu1 %v2117_v33  ;;  %v970_v32 = vcombine.high %v2306_v24, %v2306_v24  ;;  %v971_v33 = vcombine.high %v2308_v25, %v2308_v25 }
 0x119   : > { %1724 = vmatprep.subr.bf16.mxu0 %v2127_v36  ;;  %1756 = vmatprep.subr.bf16.mxu1 %v2129_v37 }
 0x11c   : > { %1726 = vmatpush3.bf16.msra.mxu0 %v2151_v46  ;;  %1758 = vmatpush3.bf16.msra.mxu1 %v2153_v47 }
 0x11d   : > { %1728 = vmatprep.subr.bf16.mxu0 %v2163_v54  ;;  %1760 = vmatprep.subr.bf16.mxu1 %v2165_v55 }
 0x120   : > { %1730 = vmatpush3.bf16.msra.mxu0 %v2187_v2  ;;  %1762 = vmatpush3.bf16.msra.mxu1 %v2189_v3 }
 0x121   : > { %1732 = vmatprep.subr.bf16.mxu0 %v2196_v5  ;;  %1764 = vmatprep.subr.bf16.mxu1 %v2198_v6 }
 0x124   : > { %1734 = vmatpush3.bf16.msra.mxu0 %v2211_v14  ;;  %1766 = vmatpush3.bf16.msra.mxu1 %v2213_v15 }
 0x125   : > { %1459 = vmatprep.subr.msk.mxu0 %vm979_vm0, %v970_v32  ;;  %1463 = vmatprep.subr.msk.mxu1 %vm979_vm0, %v971_v33 }
 0x127   : > { %829 = vmatmul.mubr.f32.vlgmr.msra.gmra.mrb[8].mxu0 %v756_v48  ;;  %904 = vmatmul.mubr.f32.vlgmr.msra.gmra.mrb[8].mxu1 %v758_v49  ;;  %v929_v49 = vpop.permute.xlu0 %928 }
 0x128   : > { %833 = vmatprep.mubr.f32.mxu0 %v761_v52  ;;  %908 = vmatprep.mubr.f32.mxu1 %v763_v53 }
 0x129   : > { %1460 = vmatpush1.msk.msra.mxu0 %vm979_vm0, %v2306_v24  ;;  %1464 = vmatpush1.msk.msra.mxu1 %vm979_vm0, %v2308_v25 }
 0x12a   : > { %1467 = vmatprep.subr.msk.mxu0 %vm979_vm0, %v970_v32  ;;  %1471 = vmatprep.subr.msk.mxu1 %vm979_vm0, %v971_v33 }
 0x12b   : > { %834 = vmatmul.mubr.f32.gmra.mrb[10].mxu0 %v760_v60  ;;  %909 = vmatmul.mubr.f32.gmra.mrb[10].mxu1 %v762_v61  ;;  %v934_v0 = vpop.permute.xlu0 %933 }
 0x12c   : > { %1052 = vmatprep.mubr.f32.mxu0 %v1844_v34  ;;  %1129 = vmatprep.mubr.f32.mxu1 %v1844_v34 }
 0x1da   : > { %v1519_v35 = vpop.f32.mrb[4].mxu0  ;;  %v1557_v36 = vpop.f32.mrb[4].mxu1 }
 0x1db   : > { %v1520_v37 = vpop.f32.mrb[5].mxu0  ;;  %v1558_v38 = vpop.f32.mrb[5].mxu1 }
 0x1dc   : > { %v1521_v41 = vadd.f32 %v1520_v37, %v1519_v35  ;;  %v1559_v42 = vadd.f32 %v1558_v38, %v1557_v36 }
 0x1de   : > { %v746_v43 = vadd.f32 %v1559_v42, %v1521_v41  ;;  %v1522_v44 = vpop.f32.mrb[6].mxu0  ;;  %v1560_v45 = vpop.f32.mrb[6].mxu1 }
 0x1df   : > { %v1523_v46 = vpop.f32.mrb[7].mxu0  ;;  %v1561_v47 = vpop.f32.mrb[7].mxu1 }
 0x1e0   : > { %v1524_v50 = vadd.f32 %v1523_v46, %v1522_v44  ;;  %v1562_v51 = vadd.f32 %v1561_v47, %v1560_v45  ;;  %v754_v57 = vmul.f32 0.00390625, %v746_v43 }
 0x1e2   : > { %v751_v54 = vadd.f32 %v1562_v51, %v1524_v50  ;;  %v916_v5 = vmul.f32 %v754_v57, %v754_v57 }
 0x1e4   : > { %v755_v10 = vmul.f32 0.00390625, %v751_v54 }
 0x1e6   : > { %v917_v18 = vmul.f32 %v755_v10, %v755_v10 }
 0x1fa   : > { %v1595_v55 = vpop.f32.mrb[8].mxu0  ;;  %v1633_v56 = vpop.f32.mrb[8].mxu1 }
 0x1fb   : > { %v1596_v58 = vpop.f32.mrb[9].mxu0  ;;  %v1634_v59 = vpop.f32.mrb[9].mxu1 }
 0x1fc   : > { %v1597_v62 = vadd.f32 %v1596_v58, %v1595_v55  ;;  %v1635_v63 = vadd.f32 %v1634_v59, %v1633_v56 }
 0x1fe   : > { %v906_v2 = vadd.f32 %v1635_v63, %v1597_v62  ;;  %v1598_v3 = vpop.f32.mrb[10].mxu0  ;;  %v1636_v4 = vpop.f32.mrb[10].mxu1 }
 0x1ff   : > { %v1599_v6 = vpop.f32.mrb[11].mxu0  ;;  %v1637_v7 = vpop.f32.mrb[11].mxu1 }
 0x200   : > { %v914_v11 = vmul.f32 0.00390625, %v906_v2  ;;  %v1600_v14 = vadd.f32 %v1599_v6, %v1598_v3  ;;  %v1638_v15 = vadd.f32 %v1637_v7, %v1636_v4 }
 0x202   : > { %v918_v16 = vsub.f32 %v914_v11, %v916_v5  ;;  %v911_v17 = vadd.f32 %v1638_v15, %v1600_v14 }
 0x204   : > { %v920_v39 = vadd.f32 1e-05, %v918_v16  ;;  %v915_v30 = vmul.f32 0.00390625, %v911_v17 }
 0x206   : > { %1830 = vrsqrt.f32 %v920_v39  ;;  %v919_v31 = vsub.f32 %v915_v30, %v917_v18 }
 0x208   : > { %v921_v48 = vadd.f32 1e-05, %v919_v31 }
 0x20a   : > { %1832 = vrsqrt.f32 %v921_v48 }
 0x210   : > { %v1831_v52 = vpop.eup %1830 }
 0x211   : > { %v936_v53 = vmul.f32 %v1831_v52, %v929_v49 }
 0x213   : > { %1461 = vmatmul.mubr.msk.f32.vlgmr.msra.gmra.mrb[12].mxu0 %vm972_vm1, %v936_v53  ;;  %1465 = vmatmul.mubr.msk.f32.vlgmr.msra.gmra.mrb[12].mxu1 %vm972_vm1, %v936_v53  ;;  %v940_v60 = vmul.f32 %v936_v53, %v754_v57 }
 0x214   : > { %v1833_v61 = vpop.eup %1832  ;;  %1468 = vmatpush1.msk.msra.mxu0 %vm979_vm0, %v2306_v24  ;;  %1472 = vmatpush1.msk.msra.mxu1 %vm979_vm0, %v2308_v25 }
 0x215   : > { %v937_v8 = vmul.f32 %v1833_v61, %v934_v0  ;;  %1058 = vmatprep.mubr.f32.mxu0 %v1844_v34  ;;  %1135 = vmatprep.mubr.f32.mxu1 %v1844_v34  ;;  %v952_v12 = vsub.f32 %v945_v1, %v940_v60 }
 0x217   : > { %1462 = vmatmul.mubr.msk.f32.gmra.mrb[14].mxu0 %vm972_vm1, %v937_v8  ;;  %1466 = vmatmul.mubr.msk.f32.gmra.mrb[14].mxu1 %vm972_vm1, %v937_v8  ;;  %v941_v9 = vmul.f32 %v937_v8, %v755_v10 }
 0x218   : > { %1220 = vmatprep.mubr.f32.mxu0 %v1844_v34  ;;  %1297 = vmatprep.mubr.f32.mxu1 %v1844_v34 }
 0x219   : > { %v953_v20 = vsub.f32 %v950_v13, %v941_v9 }
 0x21b   : > { %1469 = vmatmul.mubr.msk.f32.vlgmr.msra.gmra.mrb[16].mxu0 %vm972_vm1, %v952_v12  ;;  %1473 = vmatmul.mubr.msk.f32.vlgmr.msra.gmra.mrb[16].mxu1 %vm972_vm1, %v952_v12 }
 0x21c   : > { %1226 = vmatprep.mubr.f32.mxu0 %v1844_v34  ;;  %1303 = vmatprep.mubr.f32.mxu1 %v1844_v34 }
 0x21f   : > { %1470 = vmatmul.mubr.msk.f32.gmra.mrb[18].mxu0 %vm972_vm1, %v953_v20  ;;  %1474 = vmatmul.mubr.msk.f32.gmra.mrb[18].mxu1 %vm972_vm1, %v953_v20 }
 0x2e6   : > { %v1054_v21 = vpop.f32.mrb[12].mxu0  ;;  %v1131_v24 = vpop.f32.mrb[12].mxu1 }
 0x2e7   : > { %v1142_v25 = vmul.f32 %v1054_v21, %v2233_v40  ;;  %v1144_v32 = vmul.f32 %v1131_v24, %v2235_v19  ;;  %v1056_v33 = vpop.f32.mrb[13].mxu0  ;;  %v1133_v35 = vpop.f32.mrb[13].mxu1 }
 0x2e8   : > { %v1143_v36 = vmul.f32 %v1056_v33, %v2237_v22  ;;  %v1145_v37 = vmul.f32 %v1133_v35, %v2239_v23 }
 0x2ea   : > { %v1060_v38 = vpop.f32.mrb[14].mxu0  ;;  %v1137_v41 = vpop.f32.mrb[14].mxu1 }
 0x2eb   : > { %v1146_v34 = vmul.f32 %v1060_v38, %v2241_v26  ;;  %v1148_v42 = vmul.f32 %v1137_v41, %v2243_v27  ;;  %v1062_v43 = vpop.f32.mrb[15].mxu0  ;;  %v1139_v44 = vpop.f32.mrb[15].mxu1 }
 0x2ec   : > { %v1147_v45 = vmul.f32 %v1062_v43, %v2247_v28  ;;  %v1149_v40 = vmul.f32 %v1139_v44, %v2249_v29 }
 0x2ee   : > { %v1222_v19 = vpop.f32.mrb[16].mxu0  ;;  %v1299_v46 = vpop.f32.mrb[16].mxu1 }
 0x2ef   : > { %v1310_v47 = vadd.f32 %v1222_v19, %v1142_v25  ;;  %v1312_v50 = vadd.f32 %v1299_v46, %v1144_v32  ;;  %v1224_v22 = vpop.f32.mrb[17].mxu0  ;;  %v1301_v51 = vpop.f32.mrb[17].mxu1 }
 0x2f0   : > { %v1311_v23 = vadd.f32 %v1224_v22, %v1143_v36  ;;  %v1313_v54 = vadd.f32 %v1301_v51, %v1145_v37 }
 0x2f1   : > { %v1318_v55 = vmul.f32 0.2, %v1310_v47  ;;  %v1320_v56 = vmul.f32 0.2, %v1312_v50 }
 0x2f2   : > { %v1319_v26 = vmul.f32 0.2, %v1311_v23  ;;  %v1321_v57 = vmul.f32 0.2, %v1313_v54  ;;  %v1228_v27 = vpop.f32.mrb[18].mxu0  ;;  %v1305_v58 = vpop.f32.mrb[18].mxu1 }
 0x2f3   : > { %v1326_v59 = vmax.f32 %v1310_v47, %v1318_v55  ;;  %v1328_v62 = vmax.f32 %v1312_v50, %v1320_v56  ;;  %v1314_v28 = vadd.f32 %v1228_v27, %v1146_v34  ;;  %v1316_v63 = vadd.f32 %v1305_v58, %v1148_v42  ;;  %v1230_v29 = vpop.f32.mrb[19].mxu0  ;;  %v1307_v2 = vpop.f32.mrb[19].mxu1 }
 0x2f4   : > { %v1327_v3 = vmax.f32 %v1311_v23, %v1319_v26  ;;  %v1329_v4 = vmax.f32 %v1313_v54, %v1321_v57  ;;  %v1315_v5 = vadd.f32 %v1230_v29, %v1147_v45  ;;  %v1317_v6 = vadd.f32 %v1307_v2, %v1149_v40 }
 0x2f5   : > { %v1322_v7 = vmul.f32 0.2, %v1314_v28  ;;  %v1324_v10 = vmul.f32 0.2, %v1316_v63 }
 0x2f6   : > { %v1483_v11 = vpack.c.bf16 %v1327_v3, %v1326_v59  ;;  %v1484_v14 = vpack.c.bf16 %v1329_v4, %v1328_v62  ;;  %v1323_v15 = vmul.f32 0.2, %v1315_v5  ;;  %v1325_v16 = vmul.f32 0.2, %v1317_v6 }
 0x2f7   : > { %v1330_v17 = vmax.f32 %v1314_v28, %v1322_v7  ;;  %v1332_v18 = vmax.f32 %v1316_v63, %v1324_v10 }
 0x2f8   : > { %1358 = vst [vmem:[%s251_s14] sm:$0xff] %v1483_v11  ;;  %1359 = vst [vmem:[%s251_s14 + $0x8] sm:$0xff] %v1484_v14  ;;  %v1331_v39 = vmax.f32 %v1315_v5, %v1323_v15  ;;  %v1333_v30 = vmax.f32 %v1317_v6, %v1325_v16 }
 0x2fa   : > { %v1485_v31 = vpack.c.bf16 %v1331_v39, %v1330_v17  ;;  %v1486_v48 = vpack.c.bf16 %v1333_v30, %v1332_v18 }
 0x2fc   : > { %1360 = vst [vmem:[%s251_s14 + $0x10] sm:$0xff] %v1485_v31  ;;  %1361 = vst [vmem:[%s251_s14 + $0x18] sm:$0xff] %v1486_v48 }
 0x2fd PF: > { %s16_s21 = sadd.s32 1, %s1840_s21  }
 0x2fe   : > { %p13_p4 = scmp.ge.s32.totalorder %s16_s21, 4  }
 0x300   :  { %15 = sbr.rel (!%p13_p4) target bundleno = 1 (0x1), region = 74 }

// kernel: critic_forward.6
= control target key start
LH: loop header
LB: loop body
LE: loop exit
PB: predicated region body
PF: predicated region fallthrough
CT: control target
= control target key end

     0   :  { %s1400_s21 = smov 0   ;;  %s1574_s0 = inlined_call_operand.vmem [shape: bf16[2,256,128], index: 0, kind: input, shape index: {}]   ;;  %s1575_s1 = inlined_call_operand.vmem [shape: bf16[32,256], index: 1, kind: input, shape index: {}]   ;;  %s1576_s2 = inlined_call_operand.vmem [shape: f32[32,1], index: 2, kind: input, shape index: {}]   ;;  %s1577_s3 = inlined_call_operand.vmem [shape: f32[32,1], index: 3, kind: input, shape index: {}]   ;;  %s1578_s4 = inlined_call_operand.vmem [shape: f32[128,2], index: 4, kind: input, shape index: {}]   ;;  %s1579_s5 = inlined_call_operand.vmem [shape: f32[2,128], index: 5, kind: input, shape index: {}]   ;;  %s1580_s6 = inlined_call_operand.vmem [shape: bf16[2,32,128], index: 6, kind: output, shape index: {}]  }
   0x1 LB: > { %s1019_s22 = sadd.s32 4294967295, %s1362_s21   ;;  %p1023_p0 = scmp.ge.s32.totalorder %s1362_s21, 1  ;;  %s1362_s21 = sphi %s1400_s21, %s16_s21  }
   0x2   : > { %p212_p1 = scmp.lt.s32.totalorder %s1362_s21, 3 }
   0x4   : > { %p213_p2 = pnand %p1023_p0, %p212_p1 }
   0x5   : > { %p242_p3 = scmp.lt.s32.totalorder (!%p213_p2), %s1019_s22, 1  ;;  %v1344_v0 = vld [vmem:[%s1575_s1 + $0x4] ss:$8 sps:$4 sm:$0xff] (!%p213_p2)   ;;  %v456_v3 = vld [vmem:[%s1578_s4 + $0x10] sm:$0xff] (!%p213_p2)  ;;  %v457_v4 = vld [vmem:[%s1578_s4 + $0x18] sm:$0xff] (!%p213_p2)  ;;  %v1364_v46 = vmov (!%p213_p2), 0  }
   0x6   : > { %216 = sbr.rel (%p213_p2) target bundleno = 739 (0x2e3), region = 44  ;;  %v454_v1 = vld [vmem:[%s1578_s4] sm:$0xff] (!%p213_p2)  ;;  %437 = vmatprep.mubr.bf16.mxu0 (!%p213_p2), %v1344_v0  ;;  %v455_v2 = vld [vmem:[%s1578_s4 + $0x8] sm:$0xff] (!%p213_p2)  ;;  %v1428_v6 = vpack.c.bf16 (!%p213_p2), %v457_v4, %v456_v3  ;;  %v460_v11 = vld [vmem:[%s1578_s4 + $0x30] sm:$0xff] (!%p213_p2)  ;;  %1324 = vset.pattern.permute.xlu0 (!%p213_p2), %v1364_v46  ;;  %vm742_vm0 = vcmask (!%p213_p2), 1041408   ;;  %vm729_vm1 = vcmask (!%p213_p2), 15360  }
   0x7   : > { %v1426_v5 = vpack.c.bf16 (!%p213_p2), %v455_v2, %v454_v1  ;;  %v458_v7 = vld [vmem:[%s1578_s4 + $0x20] sm:$0xff] (!%p213_p2)  ;;  %v459_v8 = vld [vmem:[%s1578_s4 + $0x28] sm:$0xff] (!%p213_p2)  ;;  %v461_v12 = vld [vmem:[%s1578_s4 + $0x38] sm:$0xff] (!%p213_p2)  ;;  %1325 = vset.pattern.permute.xlu1 (!%p213_p2), %v1364_v46 }
   0x8   : > { %v1259_v14 = vpack.c.bf16 (!%p213_p2), %v459_v8, %v458_v7  ;;  %v462_v17 = vld [vmem:[%s1578_s4 + $0x40] sm:$0xff] (!%p213_p2)  ;;  %v1263_v18 = vpack.c.bf16 (!%p213_p2), %v461_v12, %v460_v11  ;;  %v463_v19 = vld [vmem:[%s1578_s4 + $0x48] sm:$0xff] (!%p213_p2)  ;;  %v464_v27 = vld [vmem:[%s1578_s4 + $0x50] sm:$0xff] (!%p213_p2) }
   0x9   : > { %1252 = vmatprep.subr.bf16.mxu1 (!%p213_p2), %v1426_v5  ;;  %v1267_v22 = vpack.c.bf16 (!%p213_p2), %v463_v19, %v462_v17  ;;  %v465_v28 = vld [vmem:[%s1578_s4 + $0x58] sm:$0xff] (!%p213_p2)  ;;  %v466_v29 = vld [vmem:[%s1578_s4 + $0x60] sm:$0xff] (!%p213_p2)  ;;  %v467_v31 = vld [vmem:[%s1578_s4 + $0x68] sm:$0xff] (!%p213_p2) }
   0xa   : > { %1254 = vmatpush3.bf16.msra.mxu1 (!%p213_p2), %v1426_v5  ;;  %v1271_v30 = vpack.c.bf16 (!%p213_p2), %v465_v28, %v464_v27  ;;  %v1275_v32 = vpack.c.bf16 (!%p213_p2), %v467_v31, %v466_v29  ;;  %v1342_v38 = vld [vmem:[%s1575_s1] ss:$8 sps:$4 sm:$0xff] (!%p213_p2)   ;;  %v1345_v39 = vld [vmem:[%s1575_s1 + $0x14] ss:$8 sps:$4 sm:$0xff] (!%p213_p2)   ;;  %v1347_v40 = vld [vmem:[%s1575_s1 + $0x10] ss:$8 sps:$4 sm:$0xff] (!%p213_p2)  }
   0xb   : > { %1256 = vmatprep.subr.bf16.mxu1 (!%p213_p2), %v1428_v6  ;;  %v468_v41 = vld [vmem:[%s1578_s4 + $0x70] sm:$0xff] (!%p213_p2)  ;;  %v469_v42 = vld [vmem:[%s1578_s4 + $0x78] sm:$0xff] (!%p213_p2)  ;;  %v669_v44 = vld [vmem:[%s1576_s2] sm:$0xff] (!%p213_p2) }
   0xc   : > { %v1279_v43 = vpack.c.bf16 (!%p213_p2), %v469_v42, %v468_v41  ;;  %v671_v45 = vld [vmem:[%s1576_s2 + $0x10] sm:$0xff] (!%p213_p2)  ;;  %675 = vperm.xlu0 (!%p213_p2), %1324, %v669_v44   ;;  %v670_v47 = vld [vmem:[%s1576_s2 + $0x8] sm:$0xff] (!%p213_p2)  ;;  %v672_v48 = vld [vmem:[%s1576_s2 + $0x18] sm:$0xff] (!%p213_p2) }
   0xd   : > { %s1582_s22 = smov (!%p242_p3, %s1019_s22), 1  ;;  %685 = vperm.xlu1 %1325, %v671_v45   ;;  %v697_v49 = vld [vmem:[%s1577_s3] sm:$0xff]  ;;  %v698_v50 = vld [vmem:[%s1577_s3 + $0x8] sm:$0xff]  ;;  %v699_v51 = vld [vmem:[%s1577_s3 + $0x10] sm:$0xff] }
   0xe   : > { %s1064_s9 = sshll.u32 %s1582_s22, 7  ;;  %1258 = vmatpush3.bf16.msra.mxu1 %v1428_v6  ;;  %v700_v52 = vld [vmem:[%s1577_s3 + $0x18] sm:$0xff]  ;;  %s1065_s17 = sshll.u32 %s1582_s22, 4 }
   0xf   : > { %s1433_s12 = scalar_lea.vmem %s1574_s0, %s1064_s9  ;;  %1260 = vmatprep.subr.bf16.mxu1 %v1259_v14  ;;  %s251_s20 = scalar_lea.vmem %s1580_s6, %s1065_s17 }
  0x10   : > { %v1326_v9 = vld [vmem:[%s1433_s12 + $0x40] sm:$0xff]   ;;  %v1328_v13 = vld [vmem:[%s1433_s12 + $0x48] sm:$0xff]   ;;  %v1330_v16 = vld [vmem:[%s1433_s12 + $0x50] sm:$0xff]   ;;  %680 = vperm.xlu0 %1324, %v670_v47  }
  0x11   : > { %v1327_v10 = vld [vmem:[%s1433_s12] sm:$0xff]   ;;  %1081 = vmatprep.subr.bf16.mxu0 %v1326_v9  ;;  %v1329_v15 = vld [vmem:[%s1433_s12 + $0x8] sm:$0xff]   ;;  %v1331_v20 = vld [vmem:[%s1433_s12 + $0x10] sm:$0xff]   ;;  %690 = vperm.xlu1 %1325, %v672_v48  }
  0x12   : > { %1082 = vmatpush3.bf16.msra.mxu0 %v1327_v10  ;;  %v1332_v21 = vld [vmem:[%s1433_s12 + $0x58] sm:$0xff]   ;;  %1262 = vmatpush3.bf16.msra.mxu1 %v1259_v14  ;;  %v1334_v24 = vld [vmem:[%s1433_s12 + $0x60] sm:$0xff]   ;;  %v1336_v26 = vld [vmem:[%s1433_s12 + $0x68] sm:$0xff]  }
  0x13   : > { %1083 = vmatprep.subr.bf16.mxu0 %v1328_v13  ;;  %1264 = vmatprep.subr.bf16.mxu1 %v1263_v18  ;;  %v1333_v23 = vld [vmem:[%s1433_s12 + $0x18] sm:$0xff]   ;;  %v1335_v25 = vld [vmem:[%s1433_s12 + $0x20] sm:$0xff]   ;;  %v1337_v33 = vld [vmem:[%s1433_s12 + $0x28] sm:$0xff]  }
  0x14   : > { %v1338_v34 = vld [vmem:[%s1433_s12 + $0x70] sm:$0xff]   ;;  %v1340_v36 = vld [vmem:[%s1433_s12 + $0x78] sm:$0xff]   ;;  %707 = vperm.xlu0 %1324, %v697_v49  }
  0x15   : > { %v1339_v35 = vld [vmem:[%s1433_s12 + $0x30] sm:$0xff]   ;;  %v1341_v37 = vld [vmem:[%s1433_s12 + $0x38] sm:$0xff]   ;;  %712 = vperm.xlu1 %1325, %v698_v50  }
  0x16   : > { %1084 = vmatpush3.bf16.msra.mxu0 %v1329_v15  ;;  %1266 = vmatpush3.bf16.msra.mxu1 %v1263_v18 }
  0x17   : > { %1085 = vmatprep.subr.bf16.mxu0 %v1330_v16  ;;  %1268 = vmatprep.subr.bf16.mxu1 %v1267_v22 }
  0x18   : > { %717 = vperm.xlu0 %1324, %v699_v51  }
  0x19   : > { %722 = vperm.xlu1 %1325, %v700_v52  }
  0x1a   : > { %1086 = vmatpush3.bf16.msra.mxu0 %v1331_v20  ;;  %1270 = vmatpush3.bf16.msra.mxu1 %v1267_v22 }
  0x1b   : > { %1087 = vmatprep.subr.bf16.mxu0 %v1332_v21  ;;  %1272 = vmatprep.subr.bf16.mxu1 %v1271_v30 }
  0x1e   : > { %1088 = vmatpush3.bf16.msra.mxu0 %v1333_v23  ;;  %1274 = vmatpush3.bf16.msra.mxu1 %v1271_v30 }
  0x1f   : > { %1089 = vmatprep.subr.bf16.mxu0 %v1334_v24  ;;  %1276 = vmatprep.subr.bf16.mxu1 %v1275_v32 }
  0x22   : > { %1090 = vmatpush3.bf16.msra.mxu0 %v1335_v25  ;;  %1278 = vmatpush3.bf16.msra.mxu1 %v1275_v32 }
  0x23   : > { %1091 = vmatprep.subr.bf16.mxu0 %v1336_v26  ;;  %1280 = vmatprep.subr.bf16.mxu1 %v1279_v43 }
  0x26   : > { %1092 = vmatpush3.bf16.msra.mxu0 %v1337_v33  ;;  %1282 = vmatpush3.bf16.msra.mxu1 %v1279_v43 }
  0x27   : > { %1093 = vmatprep.subr.bf16.mxu0 %v1338_v34 }
  0x2a   : > { %1094 = vmatpush3.bf16.msra.mxu0 %v1339_v35 }
  0x2b   : > { %1095 = vmatprep.subr.bf16.mxu0 %v1340_v36 }
  0x2e   : > { %1096 = vmatpush3.bf16.msra.mxu0 %v1341_v37 }
  0x2f   : > { %1284 = vmatprep.subr.bf16.mxu0 %v1426_v5 }
  0x31   : > { %438 = vmatmul.mubr.bf16.vlgmr.msra.gmra.mrb[0].mxu0 %v1342_v38 }
  0x32   : > { %445 = vmatprep.mubr.bf16.mxu0 %v1345_v39  ;;  %1286 = vmatpush3.bf16.msra.mxu0 %v1426_v5  ;;  %v470_v5 = vld [vmem:[%s1579_s5] sm:$0x3] }
  0x33   : > { %1288 = vmatprep.subr.bf16.mxu0 %v1428_v6  ;;  %1235 = vmatprep.subr.msk.mxu1 %vm742_vm0, %v470_v5 }
  0x36   : > { %1290 = vmatpush3.bf16.msra.mxu0 %v1428_v6 }
  0x37   : > { %1292 = vmatprep.subr.bf16.mxu0 %v1259_v14 }
  0x39   : > { %446 = vmatmul.mubr.bf16.gmra.mrb[4].mxu0 %v1347_v40 }
  0x3a   : > { %1294 = vmatpush3.bf16.msra.mxu0 %v1259_v14 }
  0x3b   : > { %1296 = vmatprep.subr.bf16.mxu0 %v1263_v18 }
  0x3e   : > { %1298 = vmatpush3.bf16.msra.mxu0 %v1263_v18 }
  0x3f   : > { %1300 = vmatprep.subr.bf16.mxu0 %v1267_v22 }
  0x42   : > { %1302 = vmatpush3.bf16.msra.mxu0 %v1267_v22 }
  0x43   : > { %1304 = vmatprep.subr.bf16.mxu0 %v1271_v30 }
  0x46   : > { %1306 = vmatpush3.bf16.msra.mxu0 %v1271_v30 }
  0x47   : > { %1308 = vmatprep.subr.bf16.mxu0 %v1275_v32 }
  0x4a   : > { %1310 = vmatpush3.bf16.msra.mxu0 %v1275_v32 }
  0x4b   : > { %1312 = vmatprep.subr.bf16.mxu0 %v1279_v43 }
  0x4e   : > { %1314 = vmatpush3.bf16.msra.mxu0 %v1279_v43 }
  0x8b   : > { %v676_v30 = vpop.permute.xlu0 %675 }
  0x8c   : > { %v686_v36 = vpop.permute.xlu1 %685 }
  0x8f   : > { %v681_v37 = vpop.permute.xlu0 %680 }
  0x90   : > { %v691_v43 = vpop.permute.xlu1 %690 }
  0x93   : > { %v708_v47 = vpop.permute.xlu0 %707 }
  0x94   : > { %v713_v51 = vpop.permute.xlu1 %712 }
 0x104   : > { %v1097_v53 = vpop.f32.mrb[0].mxu0 }
 0x105   : > { %v1098_v54 = vpop.f32.mrb[1].mxu0 }
 0x106   : > { %v1528_v55 = vadd.f32 %v1098_v54, %v1097_v53  ;;  %v1100_v56 = vpop.f32.mrb[2].mxu0  ;;  %v718_v54 = vpop.permute.xlu0 %717 }
 0x107   : > { %v1101_v57 = vpop.f32.mrb[3].mxu0 }
 0x108   : > { %v1530_v58 = vadd.f32 %v1101_v57, %v1100_v56  ;;  %1191 = vmatprep.mubr.f32.mxu1 %v1528_v55  ;;  %v560_v59 = vmul.f32 %v1528_v55, %v1528_v55  ;;  %v723_v57 = vpop.permute.xlu1 %722 }
 0x10a   : > { %v561_v60 = vmul.f32 %v1530_v58, %v1530_v58  ;;  %1192 = vmatmul.mubr.f32.vlgmr.msra.gmra.mrb[0].mxu1 %v1530_v58  ;;  %1229 = vmatprep.mubr.f32.mxu0 %v560_v59 }
 0x10b   : > { %1236 = vmatpush3.msk.msra.mxu1 %vm742_vm0, %v470_v5 }
 0x10c   : > { %v1103_v61 = vpop.f32.mrb[4].mxu0  ;;  %1230 = vmatmul.mubr.f32.vlgmr.msra.gmra.mrb[8].mxu0 %v561_v60  ;;  %1243 = vmatprep.subr.msk.mxu1 %vm742_vm0, %v470_v5 }
 0x10d   : > { %v1104_v62 = vpop.f32.mrb[5].mxu0 }
 0x10e   : > { %v1538_v63 = vadd.f32 %v1104_v62, %v1103_v61  ;;  %v1106_v0 = vpop.f32.mrb[6].mxu0 }
 0x10f   : > { %v1107_v1 = vpop.f32.mrb[7].mxu0 }
 0x110   : > { %v1540_v2 = vadd.f32 %v1107_v1, %v1106_v0  ;;  %1194 = vmatprep.mubr.f32.mxu1 %v1538_v63  ;;  %v562_v3 = vmul.f32 %v1538_v63, %v1538_v63 }
 0x112   : > { %1195 = vmatmul.mubr.f32.gmra.mrb[2].mxu1 %v1540_v2  ;;  %1232 = vmatprep.mubr.f32.mxu0 %v562_v3  ;;  %v563_v4 = vmul.f32 %v1540_v2, %v1540_v2 }
 0x114   : > { %1233 = vmatmul.mubr.f32.gmra.mrb[10].mxu0 %v563_v4 }
 0x1dd   : > { %v1193_v6 = vpop.f32.mrb[0].mxu1 }
 0x1de   : > { %v557_v7 = vmul.f32 0.015625, %v1193_v6  ;;  %v537_v8 = vpop.f32.mrb[1].mxu1 }
 0x1df   : > { %v556_v9 = vmul.f32 0.015625, %v537_v8  ;;  %v1231_v10 = vpop.f32.mrb[8].mxu0 }
 0x1e0   : > { %v654_v11 = vmul.f32 %v557_v7, %v557_v7  ;;  %v650_v12 = vmul.f32 0.015625, %v1231_v10  ;;  %v630_v13 = vpop.f32.mrb[9].mxu0 }
 0x1e1   : > { %v653_v14 = vmul.f32 %v556_v9, %v556_v9  ;;  %v649_v15 = vmul.f32 0.015625, %v630_v13 }
 0x1e2   : > { %v658_v16 = vsub.f32 %v650_v12, %v654_v11 }
 0x1e3   : > { %v657_v17 = vsub.f32 %v649_v15, %v653_v14 }
 0x1e4   : > { %v662_v18 = vadd.f32 1e-05, %v658_v16 }
 0x1e5   : > { %v661_v19 = vadd.f32 1e-05, %v657_v17  ;;  %v1196_v20 = vpop.f32.mrb[2].mxu1 }
 0x1e6   : > { %1348 = vrsqrt.f32 %v662_v18  ;;  %v559_v21 = vmul.f32 0.015625, %v1196_v20  ;;  %v547_v22 = vpop.f32.mrb[3].mxu1 }
 0x1e7   : > { %1350 = vrsqrt.f32 %v661_v19  ;;  %v558_v23 = vmul.f32 0.015625, %v547_v22  ;;  %v1234_v24 = vpop.f32.mrb[10].mxu0 }
 0x1e8   : > { %v656_v25 = vmul.f32 %v559_v21, %v559_v21  ;;  %v652_v26 = vmul.f32 0.015625, %v1234_v24  ;;  %v640_v27 = vpop.f32.mrb[11].mxu0 }
 0x1e9   : > { %v655_v28 = vmul.f32 %v558_v23, %v558_v23  ;;  %v651_v29 = vmul.f32 0.015625, %v640_v27 }
 0x1ea   : > { %v660_v31 = vsub.f32 %v652_v26, %v656_v25 }
 0x1eb   : > { %v659_v32 = vsub.f32 %v651_v29, %v655_v28 }
 0x1ec   : > { %v664_v33 = vadd.f32 1e-05, %v660_v31 }
 0x1ed   : > { %v663_v34 = vadd.f32 1e-05, %v659_v32 }
 0x1ee   : > { %1352 = vrsqrt.f32 %v664_v33 }
 0x1ef   : > { %1354 = vrsqrt.f32 %v663_v34 }
 0x1f0   : > { %v1349_v35 = vpop.eup %1348 }
 0x1f1   : > { %v1351_v38 = vpop.eup %1350  ;;  %v694_v39 = vmul.f32 %v1349_v35, %v681_v37 }
 0x1f2   : > { %v693_v40 = vmul.f32 %v1351_v38, %v676_v30 }
 0x1f3   : > { %v702_v41 = vmul.f32 %v694_v39, %v557_v7 }
 0x1f4   : > { %v701_v42 = vmul.f32 %v693_v40, %v556_v9  ;;  %1237 = vmatprep.mubr.msk.f32.mxu1 %vm729_vm1, %v693_v40 }
 0x1f5   : > { %1238 = vmatmul.mubr.msk.f32.vlgmr.msra.gmra.mrb[4].mxu1 %vm729_vm1, %v694_v39  ;;  %v726_v53 = vsub.f32 %v713_v51, %v702_v41 }
 0x1f6   : > { %1244 = vmatpush3.msk.msra.mxu1 %vm742_vm0, %v470_v5  ;;  %v725_v50 = vsub.f32 %v708_v47, %v701_v42 }
 0x1f8   : > { %v1353_v44 = vpop.eup %1352 }
 0x1f9   : > { %v1355_v45 = vpop.eup %1354  ;;  %v696_v46 = vmul.f32 %v1353_v44, %v691_v43 }
 0x1fa   : > { %v695_v48 = vmul.f32 %v1355_v45, %v686_v36 }
 0x1fb   : > { %v704_v49 = vmul.f32 %v696_v46, %v559_v21 }
 0x1fc   : > { %v703_v52 = vmul.f32 %v695_v48, %v558_v23  ;;  %1240 = vmatprep.mubr.msk.f32.mxu1 %vm729_vm1, %v695_v48 }
 0x1fd   : > { %1241 = vmatmul.mubr.msk.f32.gmra.mrb[6].mxu1 %vm729_vm1, %v696_v46  ;;  %v728_v59 = vsub.f32 %v723_v57, %v704_v49 }
 0x1fe   : > { %1245 = vmatprep.mubr.msk.f32.mxu1 %vm729_vm1, %v725_v50  ;;  %v727_v56 = vsub.f32 %v718_v54, %v703_v52 }
 0x201   : > { %1246 = vmatmul.mubr.msk.f32.vlgmr.msra.gmra.mrb[8].mxu1 %vm729_vm1, %v726_v53 }
 0x202   : > { %1248 = vmatprep.mubr.msk.f32.mxu1 %vm729_vm1, %v727_v56 }
 0x205   : > { %1249 = vmatmul.mubr.msk.f32.gmra.mrb[10].mxu1 %vm729_vm1, %v728_v59 }
 0x2c8   : > { %v1239_v60 = vpop.f32.mrb[4].mxu1 }
 0x2c9   : > { %v812_v61 = vpop.f32.mrb[5].mxu1  ;;  %v832_v1 = vmul.f32 %v1239_v60, %v1530_v58 }
 0x2ca   : > { %v831_v3 = vmul.f32 %v1528_v55, %v812_v61 }
 0x2d0   : > { %v1242_v62 = vpop.f32.mrb[6].mxu1 }
 0x2d1   : > { %v822_v0 = vpop.f32.mrb[7].mxu1  ;;  %v834_v8 = vmul.f32 %v1242_v62, %v1540_v2 }
 0x2d2   : > { %v833_v10 = vmul.f32 %v1538_v63, %v822_v0 }
 0x2d4   : > { %v1247_v4 = vpop.f32.mrb[8].mxu1 }
 0x2d5   : > { %v933_v5 = vadd.f32 %v1247_v4, %v832_v1  ;;  %v913_v6 = vpop.f32.mrb[9].mxu1 }
 0x2d6   : > { %v932_v7 = vadd.f32 %v913_v6, %v831_v3 }
 0x2d7   : > { %v937_v9 = vmul.f32 0.2, %v933_v5 }
 0x2d8   : > { %v936_v11 = vmul.f32 0.2, %v932_v7  ;;  %v1250_v12 = vpop.f32.mrb[10].mxu1 }
 0x2d9   : > { %v941_v13 = vmax.f32 %v933_v5, %v937_v9  ;;  %v935_v14 = vadd.f32 %v1250_v12, %v834_v8  ;;  %v923_v15 = vpop.f32.mrb[11].mxu1 }
 0x2da   : > { %v940_v16 = vmax.f32 %v932_v7, %v936_v11  ;;  %v934_v17 = vadd.f32 %v923_v15, %v833_v10 }
 0x2db   : > { %v939_v55 = vmul.f32 0.2, %v935_v14 }
 0x2dc   : > { %v1073_v58 = vpack.c.bf16 %v941_v13, %v940_v16  ;;  %v938_v18 = vmul.f32 0.2, %v934_v17 }
 0x2dd   : > { %v943_v19 = vmax.f32 %v935_v14, %v939_v55 }
 0x2de   : > { %1074 = vst [vmem:[%s251_s20] sm:$0xff] %v1073_v58   ;;  %v942_v2 = vmax.f32 %v934_v17, %v938_v18 }
 0x2e0   : > { %v1078_v20 = vpack.c.bf16 %v943_v19, %v942_v2 }
 0x2e2   : > { %1080 = vst [vmem:[%s251_s20 + $0x8] sm:$0xff] %v1078_v20  }
 0x2e3 PF: > { %s16_s21 = sadd.s32 1, %s1362_s21  }
 0x2e4   : > { %p13_p4 = scmp.ge.s32.totalorder %s16_s21, 4  }
 0x2e6   :  { %15 = sbr.rel (!%p13_p4) target bundleno = 1 (0x1), region = 74 }

// kernel: critic_forward.7
= control target key start
LH: loop header
LB: loop body
LE: loop exit
PB: predicated region body
PF: predicated region fallthrough
CT: control target
= control target key end

     0   :  { %s2238_s29 = smov 0   ;;  %s2599_s0 = inlined_call_operand.vmem [shape: bf16[2,512,32], index: 0, kind: input, shape index: {}]   ;;  %s2600_s1 = inlined_call_operand.vmem [shape: bf16[64,512], index: 1, kind: input, shape index: {}]   ;;  %s2601_s2 = inlined_call_operand.vmem [shape: f32[64,1], index: 2, kind: input, shape index: {}]   ;;  %s2602_s3 = inlined_call_operand.vmem [shape: f32[64,1], index: 3, kind: input, shape index: {}]   ;;  %s2603_s4 = inlined_call_operand.vmem [shape: f32[32,2], index: 4, kind: input, shape index: {}]   ;;  %s2604_s5 = inlined_call_operand.vmem [shape: f32[2,32], index: 5, kind: input, shape index: {}]   ;;  %s2605_s6 = inlined_call_operand.vmem [shape: f32[64,32], index: 6, kind: input, shape index: {}]   ;;  %s2606_s7 = inlined_call_operand.<no memory space> [shape: f32[1,1], index: 7, kind: input, shape index: {}]   ;;  %s2607_s8 = inlined_call_operand.vmem [shape: f32[2,1,2], index: 8, kind: output, shape index: {}]  }
   0x1   :  { %v13_v0 = vstv %s2606_s7 }
   0x2   :  { %14 = vst [vmem:[#allocation2] sm:$0x1] %v13_v0 }
   0x3 LB: > { %s1748_s30 = sadd.s32 4294967295, %s2187_s29   ;;  %p1752_p0 = scmp.ge.s32.totalorder %s2187_s29, 1  ;;  %s2187_s29 = sphi %s2238_s29, %s20_s29  }
   0x4   : > { %p264_p1 = scmp.lt.s32.totalorder %s2187_s29, 3 }
   0x6   : > { %p265_p2 = pnand %p1752_p0, %p264_p1 }
   0x7   : > { %p296_p3 = scmp.lt.s32.totalorder (!%p265_p2), %s1748_s30, 1  ;;  %v2143_v1 = vld [vmem:[%s2600_s1 + $0x4] ss:$16 sps:$4 sm:$0xff] (!%p265_p2)   ;;  %v2146_v2 = vld [vmem:[%s2600_s1 + $0xc] ss:$16 sps:$4 sm:$0xff] (!%p265_p2)   ;;  %v2189_v57 = vmov (!%p265_p2), 0  }
   0x8   : > { %268 = sbr.rel (%p265_p2) target bundleno = 1004 (0x3ec), region = 52  ;;  %689 = vmatprep.mubr.bf16.mxu0 (!%p265_p2), %v2143_v1  ;;  %754 = vmatprep.mubr.bf16.mxu1 (!%p265_p2), %v2146_v2  ;;  %v2141_v33 = vld [vmem:[%s2600_s1] ss:$16 sps:$4 sm:$0xff] (!%p265_p2)   ;;  %v2144_v35 = vld [vmem:[%s2600_s1 + $0x8] ss:$16 sps:$4 sm:$0xff] (!%p265_p2)   ;;  %vm792_vm0 = vcmask (!%p265_p2), 261120  }
   0x9   : > { %v2147_v37 = vld [vmem:[%s2600_s1 + $0x24] ss:$16 sps:$4 sm:$0xff] (!%p265_p2)   ;;  %v2149_v38 = vld [vmem:[%s2600_s1 + $0x2c] ss:$16 sps:$4 sm:$0xff] (!%p265_p2)   ;;  %v2151_v42 = vld [vmem:[%s2600_s1 + $0x20] ss:$16 sps:$4 sm:$0xff] (!%p265_p2)   ;;  %2107 = vset.pattern.permute.xlu0 (!%p265_p2), %v2189_v57  ;;  %2108 = vset.pattern.permute.xlu1 (!%p265_p2), %v2189_v57 }
   0xa   : > { %v787_v39 = vld [vmem:[%s2603_s4] sm:$0xff] (!%p265_p2)  ;;  %v788_v40 = vld [vmem:[%s2603_s4 + $0x8] sm:$0xff] (!%p265_p2)  ;;  %v789_v52 = vld [vmem:[%s2603_s4 + $0x10] sm:$0xff] (!%p265_p2)  ;;  %vm1252_vm1 = vcmask (!%p265_p2), 1041408   ;;  %vm1227_vm2 = vcmask (!%p265_p2), 15360   ;;  %vm1699_vm3 = vcmask (!%p265_p2), 8192  }
   0xb   : > { %v2310_v41 = vpack.c.bf16 (!%p265_p2), %v788_v40, %v787_v39  ;;  %v2152_v43 = vld [vmem:[%s2600_s1 + $0x28] ss:$16 sps:$4 sm:$0xff] (!%p265_p2)   ;;  %v2153_v44 = vld [vmem:[%s2600_s1 + $0x44] ss:$16 sps:$4 sm:$0xff] (!%p265_p2)   ;;  %v2155_v45 = vld [vmem:[%s2600_s1 + $0x4c] ss:$16 sps:$4 sm:$0xff] (!%p265_p2)  }
   0xc   : > { %v2157_v46 = vld [vmem:[%s2600_s1 + $0x40] ss:$16 sps:$4 sm:$0xff] (!%p265_p2)   ;;  %v2158_v47 = vld [vmem:[%s2600_s1 + $0x48] ss:$16 sps:$4 sm:$0xff] (!%p265_p2)   ;;  %v2159_v48 = vld [vmem:[%s2600_s1 + $0x64] ss:$16 sps:$4 sm:$0xff] (!%p265_p2)  }
   0xd   : > { %v2161_v49 = vld [vmem:[%s2600_s1 + $0x6c] ss:$16 sps:$4 sm:$0xff] (!%p265_p2)   ;;  %v2163_v50 = vld [vmem:[%s2600_s1 + $0x60] ss:$16 sps:$4 sm:$0xff] (!%p265_p2)   ;;  %v2164_v51 = vld [vmem:[%s2600_s1 + $0x68] ss:$16 sps:$4 sm:$0xff] (!%p265_p2)  }
   0xe   : > { %v790_v53 = vld [vmem:[%s2603_s4 + $0x18] sm:$0xff] (!%p265_p2)  ;;  %v1107_v55 = vld [vmem:[%s2601_s2] sm:$0xff] (!%p265_p2)  ;;  %v1109_v56 = vld [vmem:[%s2601_s2 + $0x10] sm:$0xff] (!%p265_p2) }
   0xf   : > { %s2609_s30 = smov (!%p296_p3, %s1748_s30), 1  ;;  %v2352_v54 = vpack.c.bf16 %v790_v53, %v789_v52  ;;  %1117 = vperm.xlu0 %2107, %v1107_v55   ;;  %1127 = vperm.xlu1 %2108, %v1109_v56   ;;  %v1108_v58 = vld [vmem:[%s2601_s2 + $0x8] sm:$0xff]  ;;  %v1163_v59 = vld [vmem:[%s2602_s3] sm:$0xff]  ;;  %v1110_v60 = vld [vmem:[%s2601_s2 + $0x18] sm:$0xff] }
  0x10   : > { %s1847_s12 = sshll.u32 %s2609_s30, 8  ;;  %v1164_v61 = vld [vmem:[%s2602_s3 + $0x8] sm:$0xff]  ;;  %v1111_v62 = vld [vmem:[%s2601_s2 + $0x20] sm:$0xff]  ;;  %v1165_v63 = vld [vmem:[%s2602_s3 + $0x10] sm:$0xff]  ;;  %s303_s20 = scalar_lea.vmem %s2607_s8, %s2609_s30 }
  0x11   : > { %s2258_s15 = scalar_lea.vmem %s2599_s0, %s1847_s12  ;;  %v1112_v0 = vld [vmem:[%s2601_s2 + $0x28] sm:$0xff]  ;;  %v1166_v1 = vld [vmem:[%s2602_s3 + $0x18] sm:$0xff]  ;;  %v1113_v2 = vld [vmem:[%s2601_s2 + $0x30] sm:$0xff] }
  0x12   : > { %v2109_v3 = vld [vmem:[%s2258_s15 + $0x40] sm:$0xff]   ;;  %v2113_v7 = vld [vmem:[%s2258_s15 + $0x48] sm:$0xff]   ;;  %v2117_v11 = vld [vmem:[%s2258_s15 + $0x50] sm:$0xff]  }
  0x13   : > { %v2110_v4 = vld [vmem:[%s2258_s15 + $0xc0] sm:$0xff]   ;;  %1848 = vmatprep.subr.bf16.mxu0 %v2109_v3  ;;  %v2114_v8 = vld [vmem:[%s2258_s15 + $0xc8] sm:$0xff]   ;;  %v2118_v12 = vld [vmem:[%s2258_s15 + $0xd0] sm:$0xff]   ;;  %1122 = vperm.xlu0 %2107, %v1108_v58  }
  0x14   : > { %v2111_v5 = vld [vmem:[%s2258_s15] sm:$0xff]   ;;  %1888 = vmatprep.subr.bf16.mxu1 %v2110_v4  ;;  %v2115_v9 = vld [vmem:[%s2258_s15 + $0x8] sm:$0xff]   ;;  %v2119_v13 = vld [vmem:[%s2258_s15 + $0x10] sm:$0xff]   ;;  %1181 = vperm.xlu1 %2108, %v1163_v59  }
  0x15   : > { %v2112_v6 = vld [vmem:[%s2258_s15 + $0x80] sm:$0xff]   ;;  %1849 = vmatpush3.bf16.msra.mxu0 %v2111_v5  ;;  %v2116_v10 = vld [vmem:[%s2258_s15 + $0x88] sm:$0xff]   ;;  %v2120_v14 = vld [vmem:[%s2258_s15 + $0x90] sm:$0xff]  }
  0x16   : > { %1889 = vmatpush3.bf16.msra.mxu1 %v2112_v6  ;;  %1850 = vmatprep.subr.bf16.mxu0 %v2113_v7  ;;  %v2121_v15 = vld [vmem:[%s2258_s15 + $0x58] sm:$0xff]   ;;  %v2125_v19 = vld [vmem:[%s2258_s15 + $0x60] sm:$0xff]   ;;  %v2129_v23 = vld [vmem:[%s2258_s15 + $0x68] sm:$0xff]  }
  0x17   : > { %1890 = vmatprep.subr.bf16.mxu1 %v2114_v8  ;;  %v2122_v16 = vld [vmem:[%s2258_s15 + $0xd8] sm:$0xff]   ;;  %v2126_v20 = vld [vmem:[%s2258_s15 + $0xe0] sm:$0xff]   ;;  %v2130_v24 = vld [vmem:[%s2258_s15 + $0xe8] sm:$0xff]   ;;  %1132 = vperm.xlu0 %2107, %v1110_v60  }
  0x18   : > { %v2123_v17 = vld [vmem:[%s2258_s15 + $0x18] sm:$0xff]   ;;  %v2127_v21 = vld [vmem:[%s2258_s15 + $0x20] sm:$0xff]   ;;  %v2131_v25 = vld [vmem:[%s2258_s15 + $0x28] sm:$0xff]   ;;  %1186 = vperm.xlu1 %2108, %v1164_v61  }
  0x19   : > { %1851 = vmatpush3.bf16.msra.mxu0 %v2115_v9  ;;  %v2124_v18 = vld [vmem:[%s2258_s15 + $0x98] sm:$0xff]   ;;  %v2128_v22 = vld [vmem:[%s2258_s15 + $0xa0] sm:$0xff]   ;;  %v2132_v26 = vld [vmem:[%s2258_s15 + $0xa8] sm:$0xff]  }
  0x1a   : > { %1891 = vmatpush3.bf16.msra.mxu1 %v2116_v10  ;;  %1852 = vmatprep.subr.bf16.mxu0 %v2117_v11  ;;  %v2133_v27 = vld [vmem:[%s2258_s15 + $0x70] sm:$0xff]   ;;  %v2137_v31 = vld [vmem:[%s2258_s15 + $0x78] sm:$0xff]   ;;  %v1167_v3 = vld [vmem:[%s2602_s3 + $0x20] sm:$0xff] }
  0x1b   : > { %1892 = vmatprep.subr.bf16.mxu1 %v2118_v12  ;;  %v2134_v28 = vld [vmem:[%s2258_s15 + $0xf0] sm:$0xff]   ;;  %v2138_v32 = vld [vmem:[%s2258_s15 + $0xf8] sm:$0xff]   ;;  %1137 = vperm.xlu0 %2107, %v1111_v62   ;;  %v1168_v5 = vld [vmem:[%s2602_s3 + $0x28] sm:$0xff] }
  0x1c   : > { %v2135_v29 = vld [vmem:[%s2258_s15 + $0x30] sm:$0xff]   ;;  %v2139_v34 = vld [vmem:[%s2258_s15 + $0x38] sm:$0xff]   ;;  %1191 = vperm.xlu1 %2108, %v1165_v63   ;;  %v1688_v8 = vld [vmem:[#allocation2] sm:$0x1] }
  0x1d   : > { %1853 = vmatpush3.bf16.msra.mxu0 %v2119_v13  ;;  %v2136_v30 = vld [vmem:[%s2258_s15 + $0xb0] sm:$0xff]   ;;  %v2140_v36 = vld [vmem:[%s2258_s15 + $0xb8] sm:$0xff]  }
  0x1e   : > { %1893 = vmatpush3.bf16.msra.mxu1 %v2120_v14  ;;  %1854 = vmatprep.subr.bf16.mxu0 %v2121_v15  ;;  %v1114_v4 = vld [vmem:[%s2601_s2 + $0x38] sm:$0xff]  ;;  %v1169_v6 = vld [vmem:[%s2602_s3 + $0x30] sm:$0xff] }
  0x1f   : > { %1894 = vmatprep.subr.bf16.mxu1 %v2122_v16  ;;  %1142 = vperm.xlu0 %2107, %v1112_v0   ;;  %v1170_v7 = vld [vmem:[%s2602_s3 + $0x38] sm:$0xff] }
  0x20   : > { %1196 = vperm.xlu1 %2108, %v1166_v1  }
  0x21   : > { %1855 = vmatpush3.bf16.msra.mxu0 %v2123_v17 }
  0x22   : > { %1895 = vmatpush3.bf16.msra.mxu1 %v2124_v18  ;;  %1856 = vmatprep.subr.bf16.mxu0 %v2125_v19 }
  0x23   : > { %1896 = vmatprep.subr.bf16.mxu1 %v2126_v20  ;;  %1147 = vperm.xlu0 %2107, %v1113_v2  }
  0x24   : > { %1201 = vperm.xlu1 %2108, %v1167_v3  }
  0x25   : > { %1857 = vmatpush3.bf16.msra.mxu0 %v2127_v21 }
  0x26   : > { %1897 = vmatpush3.bf16.msra.mxu1 %v2128_v22  ;;  %1858 = vmatprep.subr.bf16.mxu0 %v2129_v23 }
  0x27   : > { %1898 = vmatprep.subr.bf16.mxu1 %v2130_v24  ;;  %1152 = vperm.xlu0 %2107, %v1114_v4  }
  0x28   : > { %1206 = vperm.xlu1 %2108, %v1168_v5  }
  0x29   : > { %1859 = vmatpush3.bf16.msra.mxu0 %v2131_v25 }
  0x2a   : > { %1899 = vmatpush3.bf16.msra.mxu1 %v2132_v26  ;;  %1860 = vmatprep.subr.bf16.mxu0 %v2133_v27 }
  0x2b   : > { %1900 = vmatprep.subr.bf16.mxu1 %v2134_v28  ;;  %1211 = vperm.xlu0 %2107, %v1169_v6  }
  0x2c   : > { %1216 = vperm.xlu1 %2108, %v1170_v7  }
  0x2d   : > { %1861 = vmatpush3.bf16.msra.mxu0 %v2135_v29 }
  0x2e   : > { %1901 = vmatpush3.bf16.msra.mxu1 %v2136_v30  ;;  %1862 = vmatprep.subr.bf16.mxu0 %v2137_v31 }
  0x2f   : > { %1902 = vmatprep.subr.bf16.mxu1 %v2138_v32  ;;  %1691 = vperm.xlu0 %2107, %v1688_v8  }
  0x31   : > { %1863 = vmatpush3.bf16.msra.mxu0 %v2139_v34 }
  0x32   : > { %1903 = vmatpush3.bf16.msra.mxu1 %v2140_v36  ;;  %2071 = vmatprep.subr.bf16.mxu0 %v2310_v41 }
  0x33   : > { %2094 = vmatprep.subr.bf16.mxu1 %v2310_v41 }
  0x34   : > { %690 = vmatmul.mubr.bf16.vlgmr.msra.gmra.mrb[0].mxu0 %v2141_v33 }
  0x35   : > { %755 = vmatmul.mubr.bf16.vlgmr.msra.gmra.mrb[0].mxu1 %v2144_v35  ;;  %697 = vmatprep.mubr.bf16.mxu0 %v2147_v37 }
  0x36   : > { %762 = vmatprep.mubr.bf16.mxu1 %v2149_v38  ;;  %2096 = vmatpush3.bf16.msra.mxu1 %v2310_v41 }
  0x37   : > { %2073 = vmatpush3.bf16.msra.mxu0 %v2310_v41  ;;  %2095 = vmatprep.subr.bf16.mxu1 %v2352_v54 }
  0x38   : > { %2075 = vmatprep.subr.bf16.mxu0 %v2352_v54 }
  0x3a   : > { %2097 = vmatpush3.bf16.msra.mxu1 %v2352_v54 }
  0x3b   : > { %2077 = vmatpush3.bf16.msra.mxu0 %v2352_v54  ;;  %2079 = vmatprep.subr.bf16.mxu1 %v2310_v41 }
  0x3c   : > { %698 = vmatmul.mubr.bf16.gmra.mrb[4].mxu0 %v2151_v42 }
  0x3d   : > { %763 = vmatmul.mubr.bf16.gmra.mrb[4].mxu1 %v2152_v43  ;;  %705 = vmatprep.mubr.bf16.mxu0 %v2153_v44 }
  0x3e   : > { %770 = vmatprep.mubr.bf16.mxu1 %v2155_v45 }
  0x44   : > { %706 = vmatmul.mubr.bf16.gmra.mrb[8].mxu0 %v2157_v46 }
  0x45   : > { %771 = vmatmul.mubr.bf16.gmra.mrb[8].mxu1 %v2158_v47  ;;  %713 = vmatprep.mubr.bf16.mxu0 %v2159_v48 }
  0x46   : > { %778 = vmatprep.mubr.bf16.mxu1 %v2161_v49 }
  0x4c   : > { %714 = vmatmul.mubr.bf16.gmra.mrb[12].mxu0 %v2163_v50 }
  0x4d   : > { %779 = vmatmul.mubr.bf16.gmra.mrb[12].mxu1 %v2164_v51 }
 0x107   : > { %v1864_v9 = vpop.f32.mrb[0].mxu0 }
 0x108   : > { %v1904_v10 = vpop.f32.mrb[0].mxu1  ;;  %v1865_v11 = vpop.f32.mrb[1].mxu0 }
 0x109   : > { %v1866_v12 = vadd.f32 %v1865_v11, %v1864_v9  ;;  %v1905_v13 = vpop.f32.mrb[1].mxu1  ;;  %v1867_v14 = vpop.f32.mrb[2].mxu0  ;;  %v791_v11 = vld [vmem:[%s2604_s5] sm:$0x3] }
 0x10a   : > { %v1906_v15 = vadd.f32 %v1905_v13, %v1904_v10  ;;  %v1907_v16 = vpop.f32.mrb[2].mxu1  ;;  %v1868_v17 = vpop.f32.mrb[3].mxu0  ;;  %2022 = vmatprep.subr.msk.mxu0 %vm1252_vm1, %v791_v11 }
 0x10b   : > { %v1869_v18 = vadd.f32 %v1868_v17, %v1867_v14  ;;  %v1908_v19 = vpop.f32.mrb[3].mxu1 }
 0x10c   : > { %v2407_v20 = vadd.f32 %v1906_v15, %v1866_v12  ;;  %v1909_v21 = vadd.f32 %v1908_v19, %v1907_v16  ;;  %v2472_v19 = vpop.permute.xlu1 %1127 }
 0x10e   : > { %v2409_v22 = vadd.f32 %v1909_v21, %v1869_v18  ;;  %1990 = vmatprep.mubr.msk.f32.mxu0 %vm792_vm0, %v2407_v20  ;;  %v930_v3 = vmul.f32 %v2407_v20, %v2407_v20  ;;  %v2470_v18 = vpop.permute.xlu0 %1117 }
 0x10f   : > { %v1870_v23 = vpop.f32.mrb[4].mxu0 }
 0x110   : > { %v1910_v24 = vpop.f32.mrb[4].mxu1  ;;  %1991 = vmatmul.mubr.msk.f32.vlgmr.msra.gmra.mrb[16].mxu0 %vm792_vm0, %v2409_v22  ;;  %v1871_v25 = vpop.f32.mrb[5].mxu0  ;;  %v931_v4 = vmul.f32 %v2409_v22, %v2409_v22 }
 0x111   : > { %v1872_v26 = vadd.f32 %v1871_v25, %v1870_v23  ;;  %v1911_v27 = vpop.f32.mrb[5].mxu1  ;;  %v1873_v28 = vpop.f32.mrb[6].mxu0  ;;  %2023 = vmatpush3.msk.msra.mxu0 %vm1252_vm1, %v791_v11 }
 0x112   : > { %v1912_v29 = vadd.f32 %v1911_v27, %v1910_v24  ;;  %v1913_v30 = vpop.f32.mrb[6].mxu1  ;;  %v1874_v31 = vpop.f32.mrb[7].mxu0  ;;  %2087 = vmatprep.subr.bf16.mxu0 %v2310_v41 }
 0x113   : > { %v1875_v32 = vadd.f32 %v1874_v31, %v1873_v28  ;;  %v1914_v33 = vpop.f32.mrb[7].mxu1  ;;  %v2478_v27 = vpop.permute.xlu1 %1181 }
 0x114   : > { %v2415_v34 = vadd.f32 %v1912_v29, %v1872_v26  ;;  %v1915_v35 = vadd.f32 %v1914_v33, %v1913_v30  ;;  %v1123_v26 = vpop.permute.xlu0 %1122 }
 0x116   : > { %v2417_v36 = vadd.f32 %v1915_v35, %v1875_v32  ;;  %1993 = vmatprep.mubr.msk.f32.mxu0 %vm792_vm0, %v2415_v34  ;;  %v932_v5 = vmul.f32 %v2415_v34, %v2415_v34 }
 0x117   : > { %v1876_v37 = vpop.f32.mrb[8].mxu0 }
 0x118   : > { %v1916_v38 = vpop.f32.mrb[8].mxu1  ;;  %1994 = vmatmul.mubr.msk.f32.gmra.mrb[18].mxu0 %vm792_vm0, %v2417_v36  ;;  %v1877_v39 = vpop.f32.mrb[9].mxu0  ;;  %v933_v6 = vmul.f32 %v2417_v36, %v2417_v36 }
 0x119   : > { %v1878_v40 = vadd.f32 %v1877_v39, %v1876_v37  ;;  %v1917_v42 = vpop.f32.mrb[9].mxu1  ;;  %v1879_v43 = vpop.f32.mrb[10].mxu0 }
 0x11a   : > { %v1918_v44 = vadd.f32 %v1917_v42, %v1916_v38  ;;  %v1919_v45 = vpop.f32.mrb[10].mxu1  ;;  %v1880_v46 = vpop.f32.mrb[11].mxu0 }
 0x11b   : > { %v1881_v47 = vadd.f32 %v1880_v46, %v1879_v43  ;;  %v1920_v48 = vpop.f32.mrb[11].mxu1  ;;  %v2488_v39 = vpop.permute.xlu0 %1132 }
 0x11c   : > { %v2423_v49 = vadd.f32 %v1918_v44, %v1878_v40  ;;  %v1921_v50 = vadd.f32 %v1920_v48, %v1919_v45  ;;  %v2492_v44 = vpop.permute.xlu1 %1186 }
 0x11e   : > { %v2425_v51 = vadd.f32 %v1921_v50, %v1881_v47  ;;  %1996 = vmatprep.mubr.msk.f32.mxu1 %vm792_vm0, %v2423_v49  ;;  %v934_v7 = vmul.f32 %v2423_v49, %v2423_v49 }
 0x11f   : > { %v1882_v52 = vpop.f32.mrb[12].mxu0 }
 0x120   : > { %v1922_v53 = vpop.f32.mrb[12].mxu1  ;;  %1997 = vmatmul.mubr.msk.f32.vlgmr.msra.gmra.mrb[16].mxu1 %vm792_vm0, %v2425_v51  ;;  %v1883_v55 = vpop.f32.mrb[13].mxu0  ;;  %v935_v8 = vmul.f32 %v2425_v51, %v2425_v51 }
 0x121   : > { %v1884_v56 = vadd.f32 %v1883_v55, %v1882_v52  ;;  %v1923_v57 = vpop.f32.mrb[13].mxu1  ;;  %v1885_v58 = vpop.f32.mrb[14].mxu0  ;;  %2081 = vmatpush3.bf16.msra.mxu1 %v2310_v41 }
 0x122   : > { %v1924_v59 = vadd.f32 %v1923_v57, %v1922_v53  ;;  %v1925_v60 = vpop.f32.mrb[14].mxu1  ;;  %v1886_v61 = vpop.f32.mrb[15].mxu0  ;;  %2083 = vmatprep.subr.bf16.mxu1 %v2352_v54 }
 0x123   : > { %v1887_v62 = vadd.f32 %v1886_v61, %v1885_v58  ;;  %v1926_v63 = vpop.f32.mrb[15].mxu1 }
 0x124   : > { %v2433_v0 = vadd.f32 %v1924_v59, %v1884_v56  ;;  %v1927_v1 = vadd.f32 %v1926_v63, %v1925_v60 }
 0x125   : > { %2085 = vmatpush3.bf16.msra.mxu1 %v2352_v54 }
 0x126   : > { %v2436_v2 = vadd.f32 %v1927_v1, %v1887_v62  ;;  %1999 = vmatprep.mubr.msk.f32.mxu1 %vm792_vm0, %v2433_v0  ;;  %v936_v9 = vmul.f32 %v2433_v0, %v2433_v0  ;;  %2036 = vmatprep.subr.msk.mxu1 %vm1252_vm1, %v791_v11  ;;  %v1138_v1 = vpop.permute.xlu0 %1137 }
 0x128   : > { %2000 = vmatmul.mubr.msk.f32.gmra.mrb[18].mxu1 %vm792_vm0, %v2436_v2  ;;  %v937_v10 = vmul.f32 %v2436_v2, %v2436_v2 }
 0x129   : > { %2010 = vmatprep.mubr.msk.f32.mxu1 %vm792_vm0, %v930_v3 }
 0x12c   : > { %2011 = vmatmul.mubr.msk.f32.vlgmr.msra.gmra.mrb[20].mxu1 %vm792_vm0, %v931_v4 }
 0x12d   : > { %2013 = vmatprep.mubr.msk.f32.mxu1 %vm792_vm0, %v932_v5  ;;  %2037 = vmatpush3.msk.msra.mxu1 %vm1252_vm1, %v791_v11 }
 0x130   : > { %2014 = vmatmul.mubr.msk.f32.gmra.mrb[22].mxu1 %vm792_vm0, %v933_v6 }
 0x131   : > { %2016 = vmatprep.mubr.msk.f32.mxu1 %vm792_vm0, %v934_v7  ;;  %v1192_v7 = vpop.permute.xlu1 %1191 }
 0x134   : > { %2017 = vmatmul.mubr.msk.f32.gmra.mrb[24].mxu1 %vm792_vm0, %v935_v8 }
 0x135   : > { %2019 = vmatprep.mubr.msk.f32.mxu1 %vm792_vm0, %v936_v9 }
 0x138   : > { %2020 = vmatmul.mubr.msk.f32.gmra.mrb[26].mxu1 %vm792_vm0, %v937_v10 }
 0x1e3   : > { %v1992_v12 = vpop.f32.mrb[16].mxu0 }
 0x1e4   : > { %v883_v13 = vpop.f32.mrb[17].mxu0  ;;  %v2474_v23 = vmul.f32 0.0625, %v1992_v12 }
 0x1e5   : > { %v2476_v25 = vmul.f32 0.0625, %v883_v13 }
 0x1e6   : > { %v1076_v29 = vmul.f32 %v2474_v23, %v2474_v23 }
 0x1e7   : > { %v1075_v33 = vmul.f32 %v2476_v25, %v2476_v25 }
 0x1eb   : > { %v1995_v14 = vpop.f32.mrb[18].mxu0 }
 0x1ec   : > { %v893_v15 = vpop.f32.mrb[19].mxu0  ;;  %v2482_v30 = vmul.f32 0.0625, %v1995_v14 }
 0x1ed   : > { %v2486_v35 = vmul.f32 0.0625, %v893_v15 }
 0x1ee   : > { %v1078_v43 = vmul.f32 %v2482_v30, %v2482_v30 }
 0x1ef   : > { %v1077_v50 = vmul.f32 %v2486_v35, %v2486_v35 }
 0x1f3   : > { %v1998_v16 = vpop.f32.mrb[16].mxu1 }
 0x1f4   : > { %v903_v17 = vpop.f32.mrb[17].mxu1  ;;  %v2494_v45 = vmul.f32 0.0625, %v1998_v16 }
 0x1f5   : > { %v2498_v52 = vmul.f32 0.0625, %v903_v17 }
 0x1f6   : > { %v1080_v59 = vmul.f32 %v2494_v45, %v2494_v45 }
 0x1f7   : > { %v1079_v3 = vmul.f32 %v2498_v52, %v2498_v52 }
 0x1fb   : > { %v2001_v21 = vpop.f32.mrb[18].mxu1 }
 0x1fc   : > { %v913_v24 = vpop.f32.mrb[19].mxu1  ;;  %v2502_v60 = vmul.f32 0.0625, %v2001_v21 }
 0x1fd   : > { %v2506_v4 = vmul.f32 0.0625, %v913_v24  ;;  %v1143_v24 = vpop.permute.xlu0 %1142 }
 0x1fe   : > { %v1082_v11 = vmul.f32 %v2502_v60, %v2502_v60 }
 0x1ff   : > { %v2012_v28 = vpop.f32.mrb[20].mxu1  ;;  %v1081_v15 = vmul.f32 %v2506_v4, %v2506_v4 }
 0x200   : > { %v1068_v31 = vmul.f32 0.0625, %v2012_v28  ;;  %v1028_v32 = vpop.f32.mrb[21].mxu1 }
 0x201   : > { %v1067_v37 = vmul.f32 0.0625, %v1028_v32 }
 0x202   : > { %v1084_v38 = vsub.f32 %v1068_v31, %v1076_v29  ;;  %v1197_v31 = vpop.permute.xlu1 %1196 }
 0x203   : > { %v1083_v40 = vsub.f32 %v1067_v37, %v1075_v33  ;;  %v2015_v42 = vpop.f32.mrb[22].mxu1 }
 0x204   : > { %v1092_v46 = vadd.f32 1e-05, %v1084_v38  ;;  %v1070_v47 = vmul.f32 0.0625, %v2015_v42  ;;  %v1038_v48 = vpop.f32.mrb[23].mxu1 }
 0x205   : > { %v1091_v53 = vadd.f32 1e-05, %v1083_v40  ;;  %v1069_v55 = vmul.f32 0.0625, %v1038_v48  ;;  %v1148_v48 = vpop.permute.xlu0 %1147 }
 0x206   : > { %2165 = vrsqrt.f32 %v1092_v46  ;;  %v1086_v56 = vsub.f32 %v1070_v47, %v1078_v43 }
 0x207   : > { %2167 = vrsqrt.f32 %v1091_v53  ;;  %v1085_v57 = vsub.f32 %v1069_v55, %v1077_v50  ;;  %v2018_v58 = vpop.f32.mrb[24].mxu1 }
 0x208   : > { %v1094_v61 = vadd.f32 1e-05, %v1086_v56  ;;  %v1072_v62 = vmul.f32 0.0625, %v2018_v58  ;;  %v1048_v63 = vpop.f32.mrb[25].mxu1 }
 0x209   : > { %v1093_v5 = vadd.f32 1e-05, %v1085_v57  ;;  %v1071_v6 = vmul.f32 0.0625, %v1048_v63 }
 0x20a   : > { %2169 = vrsqrt.f32 %v1094_v61  ;;  %v1088_v8 = vsub.f32 %v1072_v62, %v1080_v59 }
 0x20b   : > { %2171 = vrsqrt.f32 %v1093_v5  ;;  %v1087_v9 = vsub.f32 %v1071_v6, %v1079_v3  ;;  %v2021_v10 = vpop.f32.mrb[26].mxu1 }
 0x20c   : > { %v1096_v12 = vadd.f32 1e-05, %v1088_v8  ;;  %v1074_v13 = vmul.f32 0.0625, %v2021_v10  ;;  %v1058_v14 = vpop.f32.mrb[27].mxu1 }
 0x20d   : > { %v1095_v16 = vadd.f32 1e-05, %v1087_v9  ;;  %v1073_v17 = vmul.f32 0.0625, %v1058_v14 }
 0x20e   : > { %2173 = vrsqrt.f32 %v1096_v12  ;;  %v1090_v21 = vsub.f32 %v1074_v13, %v1082_v11 }
 0x20f   : > { %2175 = vrsqrt.f32 %v1095_v16  ;;  %v1089_v28 = vsub.f32 %v1073_v17, %v1081_v15 }
 0x210   : > { %v2166_v29 = vpop.eup %2165  ;;  %v1098_v32 = vadd.f32 1e-05, %v1090_v21 }
 0x211   : > { %v2168_v33 = vpop.eup %2167  ;;  %v1156_v37 = vmul.f32 %v2166_v29, %v1123_v26  ;;  %v1097_v38 = vadd.f32 1e-05, %v1089_v28  ;;  %v1202_v26 = vpop.permute.xlu1 %1201 }
 0x212   : > { %2177 = vrsqrt.f32 %v1098_v32  ;;  %v1155_v40 = vmul.f32 %v2168_v33, %v2470_v18 }
 0x213   : > { %v1172_v42 = vmul.f32 %v1156_v37, %v2474_v23  ;;  %2179 = vrsqrt.f32 %v1097_v38 }
 0x214   : > { %v2170_v43 = vpop.eup %2169  ;;  %2024 = vmatprep.mubr.msk.f32.mxu0 %vm1227_vm2, %v1155_v40  ;;  %v1171_v46 = vmul.f32 %v1155_v40, %v2476_v25 }
 0x215   : > { %v2172_v47 = vpop.eup %2171  ;;  %2025 = vmatmul.mubr.msk.f32.vlgmr.msra.gmra.mrb[20].mxu0 %vm1227_vm2, %v1156_v37  ;;  %v1158_v50 = vmul.f32 %v2170_v43, %v2488_v39  ;;  %v1220_v18 = vsub.f32 %v2492_v44, %v1172_v42  ;;  %v1207_v59 = vpop.permute.xlu1 %1206  ;;  %v1523_v37 = vld [vmem:[%s2605_s6 + $0x8] sm:$0xff] }
 0x216   : > { %v1157_v53 = vmul.f32 %v2172_v47, %v2472_v19  ;;  %v1219_v55 = vsub.f32 %v2478_v27, %v1171_v46  ;;  %2089 = vmatpush3.bf16.msra.mxu0 %v2310_v41 }
 0x217   : > { %v1174_v23 = vmul.f32 %v1158_v50, %v2482_v30  ;;  %2091 = vmatprep.subr.bf16.mxu0 %v2352_v54  ;;  %v1153_v30 = vpop.permute.xlu0 %1152 }
 0x218   : > { %v2174_v25 = vpop.eup %2173  ;;  %2027 = vmatprep.mubr.msk.f32.mxu0 %vm1227_vm2, %v1157_v53  ;;  %2038 = vmatprep.mubr.msk.f32.mxu1 %vm1227_vm2, %v1219_v55  ;;  %v1173_v39 = vmul.f32 %v1157_v53, %v2486_v35  ;;  %v1524_v53 = vld [vmem:[%s2605_s6 + $0x10] sm:$0xff] }
 0x219   : > { %v2176_v56 = vpop.eup %2175  ;;  %2028 = vmatmul.mubr.msk.f32.gmra.mrb[22].mxu0 %vm1227_vm2, %v1158_v50  ;;  %2039 = vmatmul.mubr.msk.f32.vlgmr.msra.gmra.mrb[28].mxu1 %vm1227_vm2, %v1220_v18  ;;  %v1160_v19 = vmul.f32 %v2174_v25, %v1143_v24  ;;  %v1222_v44 = vsub.f32 %v1197_v31, %v1174_v23 }
 0x21a   : > { %v1159_v41 = vmul.f32 %v2176_v56, %v1138_v1  ;;  %v1221_v27 = vsub.f32 %v1192_v7, %v1173_v39  ;;  %2093 = vmatpush3.bf16.msra.mxu0 %v2352_v54 }
 0x21b   : > { %v1176_v57 = vmul.f32 %v1160_v19, %v2494_v45  ;;  %v1212_v5 = vpop.permute.xlu0 %1211 }
 0x21c   : > { %v2178_v58 = vpop.eup %2177  ;;  %2030 = vmatprep.mubr.msk.f32.mxu0 %vm1227_vm2, %v1159_v41  ;;  %2041 = vmatprep.mubr.msk.f32.mxu1 %vm1227_vm2, %v1221_v27  ;;  %v1175_v35 = vmul.f32 %v1159_v41, %v2498_v52  ;;  %v1217_v52 = vpop.permute.xlu1 %1216 }
 0x21d   : > { %v2180_v61 = vpop.eup %2179  ;;  %2031 = vmatmul.mubr.msk.f32.gmra.mrb[24].mxu0 %vm1227_vm2, %v1160_v19  ;;  %2042 = vmatmul.mubr.msk.f32.gmra.mrb[30].mxu1 %vm1227_vm2, %v1222_v44  ;;  %v1162_v62 = vmul.f32 %v2178_v58, %v1153_v30  ;;  %v1224_v1 = vsub.f32 %v1207_v59, %v1176_v57  ;;  %v1526_v58 = vld [vmem:[%s2605_s6 + $0x20] sm:$0xff] }
 0x21e   : > { %v1161_v63 = vmul.f32 %v2180_v61, %v1148_v48  ;;  %v1223_v54 = vsub.f32 %v1202_v26, %v1175_v35 }
 0x21f   : > { %v1178_v3 = vmul.f32 %v1162_v62, %v2502_v60 }
 0x220   : > { %2033 = vmatprep.mubr.msk.f32.mxu0 %vm1227_vm2, %v1161_v63  ;;  %2044 = vmatprep.mubr.msk.f32.mxu1 %vm1227_vm2, %v1223_v54  ;;  %v1177_v45 = vmul.f32 %v1161_v63, %v2506_v4 }
 0x221   : > { %2034 = vmatmul.mubr.msk.f32.gmra.mrb[26].mxu0 %vm1227_vm2, %v1162_v62  ;;  %2045 = vmatmul.mubr.msk.f32.gmra.mrb[32].mxu1 %vm1227_vm2, %v1224_v1  ;;  %v1226_v7 = vsub.f32 %v1217_v52, %v1178_v3 }
 0x222   : > { %v1225_v6 = vsub.f32 %v1212_v5, %v1177_v45  ;;  %v1528_v45 = vld [vmem:[%s2605_s6 + $0x30] sm:$0xff]  ;;  %v1529_v5 = vld [vmem:[%s2605_s6 + $0x38] sm:$0xff] }
 0x224   : > { %2047 = vmatprep.mubr.msk.f32.mxu1 %vm1227_vm2, %v1225_v6 }
 0x225   : > { %2048 = vmatmul.mubr.msk.f32.gmra.mrb[34].mxu1 %vm1227_vm2, %v1226_v7 }
 0x2e8   : > { %v2026_v8 = vpop.f32.mrb[20].mxu0 }
 0x2e9   : > { %v1322_v60 = vpop.f32.mrb[21].mxu0  ;;  %v1362_v9 = vmul.f32 %v2026_v8, %v2409_v22  ;;  %v1522_v22 = vld [vmem:[%s2605_s6] sm:$0xff] }
 0x2ea   : > { %v1361_v10 = vmul.f32 %v1322_v60, %v2407_v20 }
 0x2ec   : > { %v2029_v11 = vpop.f32.mrb[22].mxu0  ;;  %v2040_v4 = vpop.f32.mrb[28].mxu1 }
 0x2ed   : > { %v1499_v12 = vadd.f32 %v2040_v4, %v1362_v9  ;;  %v1332_v13 = vpop.f32.mrb[23].mxu0  ;;  %v1459_v14 = vpop.f32.mrb[29].mxu1  ;;  %v1364_v16 = vmul.f32 %v2029_v11, %v2417_v36 }
 0x2ee   : > { %v1498_v15 = vadd.f32 %v1459_v14, %v1361_v10  ;;  %v1363_v21 = vmul.f32 %v1332_v13, %v2415_v34 }
 0x2ef   : > { %v1507_v17 = vmul.f32 0.2, %v1499_v12 }
 0x2f0   : > { %v1506_v24 = vmul.f32 0.2, %v1498_v15  ;;  %v2032_v28 = vpop.f32.mrb[24].mxu0  ;;  %v2043_v29 = vpop.f32.mrb[30].mxu1 }
 0x2f1   : > { %v1515_v31 = vmax.f32 %v1499_v12, %v1507_v17  ;;  %v1501_v20 = vadd.f32 %v2043_v29, %v1364_v16  ;;  %v1342_v32 = vpop.f32.mrb[25].mxu0  ;;  %v1469_v33 = vpop.f32.mrb[31].mxu1  ;;  %v1366_v40 = vmul.f32 %v2032_v28, %v2425_v51  ;;  %v1525_v51 = vld [vmem:[%s2605_s6 + $0x18] sm:$0xff] }
 0x2f2   : > { %v1514_v38 = vmax.f32 %v1498_v15, %v1506_v24  ;;  %v1500_v36 = vadd.f32 %v1469_v33, %v1363_v21  ;;  %v1365_v43 = vmul.f32 %v1342_v32, %v2423_v49 }
 0x2f3   : > { %v1509_v34 = vmul.f32 0.2, %v1501_v20  ;;  %v1531_v50 = vmul.f32 %v1523_v37, %v1515_v31 }
 0x2f4   : > { %v1530_v42 = vmul.f32 %v1522_v22, %v1514_v38  ;;  %v1508_v46 = vmul.f32 0.2, %v1500_v36  ;;  %v2035_v47 = vpop.f32.mrb[26].mxu0  ;;  %v2046_v48 = vpop.f32.mrb[32].mxu1  ;;  %v1694_v38 = vlaneseq }
 0x2f5   : > { %v1517_v26 = vmax.f32 %v1501_v20, %v1509_v34  ;;  %v1503_v55 = vadd.f32 %v2046_v48, %v1366_v40  ;;  %v1352_v18 = vpop.f32.mrb[27].mxu0  ;;  %v1479_v23 = vpop.f32.mrb[33].mxu1  ;;  %v1368_v49 = vmul.f32 %v2035_v47, %v2436_v2  ;;  %v1527_v2 = vld [vmem:[%s2605_s6 + $0x28] sm:$0xff] }
 0x2f6   : > { %v1516_v25 = vmax.f32 %v1500_v36, %v1508_v46  ;;  %v1502_v39 = vadd.f32 %v1479_v23, %v1365_v43  ;;  %2058 = vmatprep.mubr.msk.f32.mxu0 %vm792_vm0, %v1530_v42  ;;  %v1367_v41 = vmul.f32 %v1352_v18, %v2433_v0  ;;  %v1695_v34 = vshrl.u32 %v1694_v38, 7  ;;  %v1692_v48 = vpop.permute.xlu0 %1691 }
 0x2f7   : > { %v1511_v56 = vmul.f32 0.2, %v1503_v55  ;;  %2059 = vmatmul.mubr.msk.f32.vlgmr.msra.gmra.mrb[28].mxu0 %vm792_vm0, %v1531_v50  ;;  %v1533_v44 = vmul.f32 %v1525_v51, %v1517_v26 }
 0x2f8   : > { %v1532_v19 = vmul.f32 %v1524_v53, %v1516_v25  ;;  %v1510_v27 = vmul.f32 0.2, %v1502_v39  ;;  %v2049_v30 = vpop.f32.mrb[34].mxu1  ;;  %v1696_v46 = vsub.s32 0, %v1695_v34 }
 0x2f9   : > { %v1519_v57 = vmax.f32 %v1503_v55, %v1511_v56  ;;  %v1505_v59 = vadd.f32 %v2049_v30, %v1368_v49  ;;  %v1489_v35 = vpop.f32.mrb[35].mxu1 }
 0x2fa   : > { %v1518_v61 = vmax.f32 %v1502_v39, %v1510_v27  ;;  %v1504_v62 = vadd.f32 %v1489_v35, %v1367_v41  ;;  %2061 = vmatprep.mubr.msk.f32.mxu0 %vm792_vm0, %v1532_v19  ;;  %v1697_v26 = vrot.slane %v1692_v48, %v1696_v46 }
 0x2fb   : > { %v1513_v63 = vmul.f32 0.2, %v1505_v59  ;;  %2062 = vmatmul.mubr.msk.f32.gmra.mrb[30].mxu0 %vm792_vm0, %v1533_v44  ;;  %v1535_v1 = vmul.f32 %v1527_v2, %v1519_v57 }
 0x2fc   : > { %v1534_v0 = vmul.f32 %v1526_v58, %v1518_v61  ;;  %v1512_v54 = vmul.f32 0.2, %v1504_v62 }
 0x2fd   : > { %v1521_v3 = vmax.f32 %v1505_v59, %v1513_v63 }
 0x2fe   : > { %v1520_v52 = vmax.f32 %v1504_v62, %v1512_v54  ;;  %2064 = vmatprep.mubr.msk.f32.mxu0 %vm792_vm0, %v1534_v0 }
 0x2ff   : > { %2065 = vmatmul.mubr.msk.f32.gmra.mrb[32].mxu0 %vm792_vm0, %v1535_v1  ;;  %v1537_v7 = vmul.f32 %v1529_v5, %v1521_v3 }
 0x300   : > { %v1536_v6 = vmul.f32 %v1528_v45, %v1520_v52 }
 0x302   : > { %2067 = vmatprep.mubr.msk.f32.mxu0 %vm792_vm0, %v1536_v6 }
 0x303   : > { %2068 = vmatmul.mubr.msk.f32.gmra.mrb[34].mxu0 %vm792_vm0, %v1537_v7 }
 0x3ca   : > { %v2060_v8 = vpop.f32.mrb[28].mxu0 }
 0x3cb   : > { %v1668_v60 = vsel %vm1227_vm2, %v2060_v8, 0.0  ;;  %v1628_v9 = vpop.f32.mrb[29].mxu0 }
 0x3cc   : > { %v1667_v10 = vsel %vm1227_vm2, %v1628_v9, 0.0 }
 0x3cd   : > { %v1669_v11 = vadd.f32 %v1668_v60, %v1667_v10 }
 0x3ce   : > { %v2063_v4 = vpop.f32.mrb[30].mxu0 }
 0x3cf   : > { %v1638_v12 = vpop.f32.mrb[31].mxu0  ;;  %v1672_v15 = vsel %vm1227_vm2, %v2063_v4, 0.0 }
 0x3d0   : > { %v1670_v13 = vsel %vm1227_vm2, %v1638_v12, 0.0 }
 0x3d1   : > { %v1671_v14 = vadd.f32 %v1670_v13, %v1669_v11 }
 0x3d2   : > { %v2066_v16 = vpop.f32.mrb[32].mxu0 }
 0x3d3   : > { %v1648_v17 = vpop.f32.mrb[33].mxu0  ;;  %v1673_v21 = vadd.f32 %v1672_v15, %v1671_v14  ;;  %v1676_v29 = vsel %vm1227_vm2, %v2066_v16, 0.0 }
 0x3d4   : > { %v1674_v24 = vsel %vm1227_vm2, %v1648_v17, 0.0 }
 0x3d5   : > { %v1675_v28 = vadd.f32 %v1674_v24, %v1673_v21 }
 0x3d6   : > { %v2069_v31 = vpop.f32.mrb[34].mxu0 }
 0x3d7   : > { %v1658_v22 = vpop.f32.mrb[35].mxu0  ;;  %v1677_v20 = vadd.f32 %v1676_v29, %v1675_v28  ;;  %v1680_v37 = vsel %vm1227_vm2, %v2069_v31, 0.0 }
 0x3d8   : > { %v1678_v32 = vsel %vm1227_vm2, %v1658_v22, 0.0 }
 0x3d9   : > { %v1679_v33 = vadd.f32 %v1678_v32, %v1677_v20 }
 0x3db   : > { %v1681_v36 = vadd.f32 %v1680_v37, %v1679_v33 }
 0x3dd   : > { %v1682_v40 = vrot.slane %v1681_v36, 4 }
 0x3df   : > { %v1683_v42 = vadd.f32 %v1682_v40, %v1681_v36 }
 0x3e1   : > { %v1684_v43 = vrot.slane %v1683_v42, 2 }
 0x3e3   : > { %v1685_v47 = vadd.f32 %v1684_v43, %v1683_v42 }
 0x3e5   : > { %v1686_v50 = vrot.slane %v1685_v47, 1 }
 0x3e7   : > { %v1687_v53 = vadd.f32 %v1686_v50, %v1685_v47 }
 0x3e9   : > { %v1698_v55 = vadd.f32 %v1697_v26, %v1687_v53 }
 0x3eb   : > { %1700 = vst.msk [vmem:[%s303_s20] sm:$0x1] %vm1699_vm3, %v1698_v55 }
 0x3ec PF: > { %s20_s29 = sadd.s32 1, %s2187_s29  }
 0x3ed   : > { %p17_p4 = scmp.ge.s32.totalorder %s20_s29, 4  }
 0x3ef   :  { %19 = sbr.rel (!%p17_p4) target bundleno = 3 (0x3), region = 82 }

</bundles_post_ra>
